<compile_context>
chip_gen: v7x
topology: tpu7x:2x2x1
jax: 0.10.0
libtpu: 0.0.40
codegen_flags: <defaults>
</compile_context>

<pallas_src>
import jax
import jax.numpy as jnp
from jax.experimental import pallas as pl
from jax.experimental.pallas import tpu as pltpu

# ---- small synthetic config (BertConfig scaled down) -----------------------
B, S, H = 2, 8, 32                 # batch, seq, hidden
T = B * S                          # flattened token rows
NUM_HEADS = 4
HEAD_DIM = H // NUM_HEADS
INTER = 64                         # intermediate (FFN) size
NUM_LAYERS = 2
NUM_EMOTIONS = 7
VOCAB = 100
H2 = H // 2                        # classifier hidden
OUT_PAD = 128                      # lane-dense padded logits width
LN_EPS_BERT = 1e-12                # BERT LayerNorm eps
LN_EPS_CLS = 1e-5                  # nn.LayerNorm default eps


# ---------------------------------------------------------------------------
# kernel helpers
# ---------------------------------------------------------------------------
def _layer_norm(x, g, b, eps):
    mu = jnp.mean(x, axis=-1, keepdims=True)
    var = jnp.mean((x - mu) ** 2, axis=-1, keepdims=True)
    return (x - mu) * jax.lax.rsqrt(var + eps) * g + b


# ---------------------------------------------------------------------------
# fused Pallas kernel: embed-LN -> NUM_LAYERS encoder layers -> pooler -> head
# Single invocation (no grid); whole batch processed as T = B*S rows.
# ---------------------------------------------------------------------------
def fused_bert_kernel(bias_ref, emb_ref, embln_ref,
                      wqkv_ref, bqkv_ref, wo_ref,
                      wff1_ref, bff1_ref, wff2_ref, vecs_ref,
                      headm_ref, headw2_ref, headvec_ref, clsb2_ref,
                      o_ref):
    bias = bias_ref[...]                     # (T, T) block-diag + key-mask additive bias
    x = emb_ref[...]                         # (T, H) f32 embeddings (batch flattened)

    embln = embln_ref[...]                   # (2, H): gamma, beta
    x = _layer_norm(x, embln[0:1, :], embln[1:2, :], LN_EPS_BERT)

    for l in range(NUM_LAYERS):              # static unroll, tiny layer count
        vec = vecs_ref[l]                    # (6, H) f32
        bo, ln1g, ln1b = vec[0:1], vec[1:2], vec[2:3]
        ln2g, ln2b, b2 = vec[3:4], vec[4:5], vec[5:6]

        xb = x.astype(jnp.bfloat16)
        # fused QKV projection: one (T, 3H) matmul, one bias add (wq/bq pre-scaled)
        qkv = jnp.dot(xb, wqkv_ref[l],
                      preferred_element_type=jnp.float32) + bqkv_ref[l]
        qkvb = qkv.astype(jnp.bfloat16)      # (T, 3H)
        q3 = qkvb[:, 0 * H:1 * H].reshape(T, NUM_HEADS, HEAD_DIM)
        k3 = qkvb[:, 1 * H:2 * H].reshape(T, NUM_HEADS, HEAD_DIM)
        v3 = qkvb[:, 2 * H:3 * H].reshape(T, NUM_HEADS, HEAD_DIM)

        # batched-over-heads attention over all B*S rows; cross-batch pairs are
        # masked to -1e9 via the precomputed block-diagonal bias (exact zeros).
        s = jnp.einsum('qhd,khd->hqk', q3, k3,
                       preferred_element_type=jnp.float32)      # (heads, T, T)
        s = s + bias
        s = s - jnp.max(s, axis=-1, keepdims=True)
        pr = jnp.exp(s)
        pr = pr * pl.reciprocal(jnp.sum(pr, axis=-1, keepdims=True), approx=True)
        ctx = jnp.einsum('hqk,khd->qhd', pr.astype(jnp.bfloat16), v3,
                         preferred_element_type=jnp.float32)    # (T, heads, d)
        ctx = ctx.reshape(T, H)

        attn_out = jnp.dot(ctx.astype(jnp.bfloat16), wo_ref[l],
                           preferred_element_type=jnp.float32) + bo
        h1 = _layer_norm(x + attn_out, ln1g, ln1b, LN_EPS_BERT)

        inter = jnp.dot(h1.astype(jnp.bfloat16), wff1_ref[l],
                        preferred_element_type=jnp.float32) + bff1_ref[l]
        # TODO(synk): HF BERT uses erf-based GELU; tanh approximation used here.
        inter = jax.nn.gelu(inter, approximate=True)
        ffn_out = jnp.dot(inter.astype(jnp.bfloat16), wff2_ref[l],
                          preferred_element_type=jnp.float32) + b2
        x = _layer_norm(h1 + ffn_out, ln2g, ln2b, LN_EPS_BERT)

    # ---- pooler (tanh on [CLS]) + classifier head, all batch rows at once ---
    hm = headm_ref[...]                      # (2, H, H) bf16: pool_w, cls_w1 (padded)
    hv = headvec_ref[...]                    # (4, H) f32
    pool_b, cls_ln_g, cls_ln_b, cls_b1 = hv[0:1], hv[1:2], hv[2:3], hv[3:4]

    # [CLS] token of every batch element (row b*S of the flattened activations)
    cls_tok = jnp.concatenate([x[b * S:b * S + 1, :] for b in range(B)], axis=0)
    pooled = jnp.tanh(
        jnp.dot(cls_tok.astype(jnp.bfloat16), hm[0],
                preferred_element_type=jnp.float32) + pool_b)    # (B, H)
    y = _layer_norm(pooled, cls_ln_g, cls_ln_b, LN_EPS_CLS)
    y = jnp.maximum(
        jnp.dot(y.astype(jnp.bfloat16), hm[1],
                preferred_element_type=jnp.float32) + cls_b1, 0.0)
    # TODO(synk): Dropout(0.1) is identity at inference; omitted.
    logits = jnp.dot(y.astype(jnp.bfloat16), headw2_ref[...],
                     preferred_element_type=jnp.float32) + clsb2_ref[...]
    o_ref[...] = logits                      # (B, OUT_PAD), single lane-dense store


# ---------------------------------------------------------------------------
# wrapper
# ---------------------------------------------------------------------------
def emotion_bert_forward(p, packed, input_ids, attention_mask):
    # embeddings (gather glue stays in JAX), flattened to (B*S, H)
    pos_ids = jnp.arange(S)
    emb = (p["word_emb"][input_ids]
           + p["pos_emb"][pos_ids][None, :, :]
           + p["type_emb"][0][None, None, :]).astype(jnp.float32)
    emb_flat = emb.reshape(T, H)

    # block-diagonal additive attention bias over flattened rows:
    #   0 where (same batch AND key attended), -1e9 otherwise.  (T, T)
    key_mask = attention_mask.astype(jnp.float32).reshape(T)
    batch_ids = jnp.arange(T) // S
    same_batch = (batch_ids[:, None] == batch_ids[None, :]).astype(jnp.float32)
    bias2d = (1.0 - same_batch * key_mask[None, :]) * jnp.float32(-1e9)

    operands = (bias2d, emb_flat,
                packed["emb_ln"], packed["w_qkv"], packed["b_qkv"],
                packed["w_o"], packed["w_ffn1"], packed["b_ffn1"],
                packed["w_ffn2"], packed["vecs"],
                packed["head_mats"], packed["cls_w2p"], packed["head_vec"],
                packed["cls_b2p"])

    logits_padded = pl.pallas_call(
        fused_bert_kernel,
        out_shape=jax.ShapeDtypeStruct((B, OUT_PAD), jnp.float32),
        in_specs=[pl.BlockSpec(memory_space=pltpu.MemorySpace.VMEM)] * len(operands),
        out_specs=pl.BlockSpec(memory_space=pltpu.MemorySpace.VMEM),
    )(*operands)
    return logits_padded[:, :NUM_EMOTIONS]


# ---------------------------------------------------------------------------
# parameters (deterministic, synthetic) + packing for the fused kernel
# ---------------------------------------------------------------------------
def init_params(key):
    def nrm(k, shape, scale=0.02):
        return (scale * jax.random.normal(k, shape)).astype(jnp.float32)

    keys = iter(jax.random.split(key, 128))
    p = {
        "word_emb": nrm(next(keys), (VOCAB, H)),
        "pos_emb":  nrm(next(keys), (S, H)),
        "type_emb": nrm(next(keys), (2, H)),
        "emb_ln_g": jnp.ones((1, H), jnp.float32),
        "emb_ln_b": jnp.zeros((1, H), jnp.float32),
        "layers": [],
        "pool_w": nrm(next(keys), (H, H)),
        "pool_b": jnp.zeros((1, H), jnp.float32),
        "cls_ln_g": jnp.ones((1, H), jnp.float32),
        "cls_ln_b": jnp.zeros((1, H), jnp.float32),
        "cls_w1": nrm(next(keys), (H, H2)),
        "cls_b1": jnp.zeros((1, H2), jnp.float32),
        "cls_w2": nrm(next(keys), (H2, NUM_EMOTIONS)),
        "cls_b2": jnp.zeros((1, NUM_EMOTIONS), jnp.float32),
    }
    for _ in range(NUM_LAYERS):
        p["layers"].append({
            "wq": nrm(next(keys), (H, H)), "bq": jnp.zeros((1, H), jnp.float32),
            "wk": nrm(next(keys), (H, H)), "bk": jnp.zeros((1, H), jnp.float32),
            "wv": nrm(next(keys), (H, H)), "bv": jnp.zeros((1, H), jnp.float32),
            "wo": nrm(next(keys), (H, H)), "bo": jnp.zeros((1, H), jnp.float32),
            "ln1_g": jnp.ones((1, H), jnp.float32),
            "ln1_b": jnp.zeros((1, H), jnp.float32),
            "w1": nrm(next(keys), (H, INTER)),
            "b1": jnp.zeros((1, INTER), jnp.float32),
            "w2": nrm(next(keys), (INTER, H)),
            "b2": jnp.zeros((1, H), jnp.float32),
            "ln2_g": jnp.ones((1, H), jnp.float32),
            "ln2_b": jnp.zeros((1, H), jnp.float32),
        })
    return p


def pack_params(p):
    """Stack per-layer weights (QKV fused, wq/bq pre-scaled by 1/sqrt(d_head)) and
    pack tiny vectors so the fused kernel takes a handful of resident inputs."""
    layers = p["layers"]
    scale = 1.0 / (HEAD_DIM ** 0.5)

    w_qkv = jnp.stack([jnp.concatenate(
        [lp["wq"] * scale, lp["wk"], lp["wv"]], axis=1)
        for lp in layers]).astype(jnp.bfloat16)                        # (L,H,3H)
    b_qkv = jnp.stack([jnp.concatenate(
        [lp["bq"] * scale, lp["bk"], lp["bv"]], axis=1)
        for lp in layers])                                             # (L,1,3H)
    w_o = jnp.stack([lp["wo"] for lp in layers]).astype(jnp.bfloat16)  # (L,H,H)
    w_ffn1 = jnp.stack([lp["w1"] for lp in layers]).astype(jnp.bfloat16)  # (L,H,INTER)
    b_ffn1 = jnp.stack([lp["b1"] for lp in layers])                    # (L,1,INTER)
    w_ffn2 = jnp.stack([lp["w2"] for lp in layers]).astype(jnp.bfloat16)  # (L,INTER,H)
    vecs = jnp.stack([jnp.concatenate(
        [lp["bo"], lp["ln1_g"], lp["ln1_b"], lp["ln2_g"], lp["ln2_b"], lp["b2"]],
        axis=0) for lp in layers])                                     # (L,6,H)

    emb_ln = jnp.concatenate([p["emb_ln_g"], p["emb_ln_b"]], axis=0)   # (2,H)

    # classifier head: pad the H/2 hidden and NUM_EMOTIONS dims so every matmul
    # / store is lane-dense (zero padding + ReLU keeps results exact).
    cls_w1p = jnp.zeros((H, H), jnp.float32).at[:, :H2].set(p["cls_w1"])
    head_mats = jnp.stack([p["pool_w"], cls_w1p]).astype(jnp.bfloat16)  # (2,H,H)
    cls_w2p = (jnp.zeros((H, OUT_PAD), jnp.float32)
               .at[:H2, :NUM_EMOTIONS].set(p["cls_w2"])).astype(jnp.bfloat16)
    cls_b1p = jnp.zeros((1, H), jnp.float32).at[:, :H2].set(p["cls_b1"])
    head_vec = jnp.concatenate(
        [p["pool_b"], p["cls_ln_g"], p["cls_ln_b"], cls_b1p], axis=0)  # (4,H)
    cls_b2p = jnp.zeros((1, OUT_PAD), jnp.float32).at[:, :NUM_EMOTIONS].set(p["cls_b2"])

    return {"emb_ln": emb_ln, "w_qkv": w_qkv, "b_qkv": b_qkv, "w_o": w_o,
            "w_ffn1": w_ffn1, "b_ffn1": b_ffn1, "w_ffn2": w_ffn2, "vecs": vecs,
            "head_mats": head_mats, "cls_w2p": cls_w2p,
            "head_vec": head_vec, "cls_b2p": cls_b2p}


if __name__ == "__main__":
    key = jax.random.PRNGKey(0)
    k_param, k_ids = jax.random.split(key)
    params = init_params(k_param)
    packed = pack_params(params)

    input_ids = jax.random.randint(k_ids, (B, S), 0, VOCAB, dtype=jnp.int32)
    attention_mask = jnp.ones((B, S), jnp.float32).at[1, 6:].set(0.0)

    logits = emotion_bert_forward(params, packed, input_ids, attention_mask)
    jax.block_until_ready(logits)
    assert logits.shape == (B, NUM_EMOTIONS) and logits.dtype == jnp.float32
    print("KERNEL_OK")
</pallas_src>

<mosaic_0001>
module attributes {stable_mosaic.version = 11 : i64} {
  func.func @fused_bert_kernel(%arg0: memref<16x16xf32, #tpu.memory_space<vmem>>, %arg1: memref<16x32xf32, #tpu.memory_space<vmem>>, %arg2: memref<2x32xf32, #tpu.memory_space<vmem>>, %arg3: memref<2x32x96xbf16, #tpu.memory_space<vmem>>, %arg4: memref<2x1x96xf32, #tpu.memory_space<vmem>>, %arg5: memref<2x32x32xbf16, #tpu.memory_space<vmem>>, %arg6: memref<2x32x64xbf16, #tpu.memory_space<vmem>>, %arg7: memref<2x1x64xf32, #tpu.memory_space<vmem>>, %arg8: memref<2x64x32xbf16, #tpu.memory_space<vmem>>, %arg9: memref<2x6x32xf32, #tpu.memory_space<vmem>>, %arg10: memref<2x32x32xbf16, #tpu.memory_space<vmem>>, %arg11: memref<32x128xbf16, #tpu.memory_space<vmem>>, %arg12: memref<4x32xf32, #tpu.memory_space<vmem>>, %arg13: memref<1x128xf32, #tpu.memory_space<vmem>>, %arg14: memref<2x128xf32, #tpu.memory_space<vmem>>) attributes {dimension_semantics = [], scalar_prefetch = 0 : i64, scratch_operands = 0 : i64, tpu.core_type = #tpu.core_type<tc>} {
    %c0 = arith.constant 0 : index
    %c0_0 = arith.constant 0 : index
    %0 = vector.load %arg0[%c0, %c0_0] : memref<16x16xf32, #tpu.memory_space<vmem>>, vector<16x16xf32>
    %c0_1 = arith.constant 0 : index
    %c0_2 = arith.constant 0 : index
    %1 = vector.load %arg1[%c0_1, %c0_2] : memref<16x32xf32, #tpu.memory_space<vmem>>, vector<16x32xf32>
    %c0_3 = arith.constant 0 : index
    %c0_4 = arith.constant 0 : index
    %2 = vector.load %arg2[%c0_3, %c0_4] : memref<2x32xf32, #tpu.memory_space<vmem>>, vector<2x32xf32>
    %3 = vector.extract_strided_slice %2 {offsets = [0, 0], sizes = [1, 32], strides = [1, 1]} : vector<2x32xf32> to vector<1x32xf32>
    %4 = vector.extract_strided_slice %2 {offsets = [1, 0], sizes = [1, 32], strides = [1, 1]} : vector<2x32xf32> to vector<1x32xf32>
    %cst = arith.constant dense<0.000000e+00> : vector<16xf32>
    %5 = vector.multi_reduction <add>, %1, %cst [1] : vector<16x32xf32> to vector<16xf32>
    %6 = vector.shape_cast %5 : vector<16xf32> to vector<16x1xf32>
    %cst_5 = arith.constant 3.200000e+01 : f32
    %7 = vector.broadcast %cst_5 : f32 to vector<16x1xf32>
    %8 = arith.divf %6, %7 : vector<16x1xf32>
    %9 = vector.broadcast %8 : vector<16x1xf32> to vector<16x32xf32>
    %10 = arith.subf %1, %9 : vector<16x32xf32>
    %11 = arith.mulf %10, %10 : vector<16x32xf32>
    %cst_6 = arith.constant dense<0.000000e+00> : vector<16xf32>
    %12 = vector.multi_reduction <add>, %11, %cst_6 [1] : vector<16x32xf32> to vector<16xf32>
    %13 = vector.shape_cast %12 : vector<16xf32> to vector<16x1xf32>
    %cst_7 = arith.constant 3.200000e+01 : f32
    %14 = vector.broadcast %cst_7 : f32 to vector<16x1xf32>
    %15 = arith.divf %13, %14 : vector<16x1xf32>
    %16 = vector.broadcast %8 : vector<16x1xf32> to vector<16x32xf32>
    %17 = arith.subf %1, %16 : vector<16x32xf32>
    %cst_8 = arith.constant 9.99999996E-13 : f32
    %18 = vector.broadcast %cst_8 : f32 to vector<16x1xf32>
    %19 = arith.addf %15, %18 : vector<16x1xf32>
    %20 = math.rsqrt %19 : vector<16x1xf32>
    %21 = vector.broadcast %20 : vector<16x1xf32> to vector<16x32xf32>
    %22 = arith.mulf %17, %21 : vector<16x32xf32>
    %23 = vector.broadcast %3 : vector<1x32xf32> to vector<16x32xf32>
    %24 = arith.mulf %22, %23 : vector<16x32xf32>
    %25 = vector.broadcast %4 : vector<1x32xf32> to vector<16x32xf32>
    %26 = arith.addf %24, %25 : vector<16x32xf32>
    %c0_9 = arith.constant 0 : index
    %c0_10 = arith.constant 0 : index
    %c0_11 = arith.constant 0 : index
    %27 = vector.load %arg9[%c0_9, %c0_10, %c0_11] : memref<2x6x32xf32, #tpu.memory_space<vmem>>, vector<1x6x32xf32>
    %28 = vector.shape_cast %27 : vector<1x6x32xf32> to vector<6x32xf32>
    %29 = vector.extract_strided_slice %28 {offsets = [0, 0], sizes = [1, 32], strides = [1, 1]} : vector<6x32xf32> to vector<1x32xf32>
    %30 = vector.extract_strided_slice %28 {offsets = [1, 0], sizes = [1, 32], strides = [1, 1]} : vector<6x32xf32> to vector<1x32xf32>
    %31 = vector.extract_strided_slice %28 {offsets = [2, 0], sizes = [1, 32], strides = [1, 1]} : vector<6x32xf32> to vector<1x32xf32>
    %32 = vector.extract_strided_slice %28 {offsets = [3, 0], sizes = [1, 32], strides = [1, 1]} : vector<6x32xf32> to vector<1x32xf32>
    %33 = vector.extract_strided_slice %28 {offsets = [4, 0], sizes = [1, 32], strides = [1, 1]} : vector<6x32xf32> to vector<1x32xf32>
    %34 = vector.extract_strided_slice %28 {offsets = [5, 0], sizes = [1, 32], strides = [1, 1]} : vector<6x32xf32> to vector<1x32xf32>
    %35 = arith.truncf %26 : vector<16x32xf32> to vector<16x32xbf16>
    %c0_12 = arith.constant 0 : index
    %c0_13 = arith.constant 0 : index
    %c0_14 = arith.constant 0 : index
    %36 = vector.load %arg3[%c0_12, %c0_13, %c0_14] : memref<2x32x96xbf16, #tpu.memory_space<vmem>>, vector<1x32x96xbf16>
    %37 = vector.shape_cast %36 : vector<1x32x96xbf16> to vector<32x96xbf16>
    %cst_15 = arith.constant dense<0.000000e+00> : vector<16x96xf32>
    %38 = tpu.matmul %35, %37, %cst_15 {dimension_numbers = #tpu.dot_dimension_numbers<[1], [0], [0], [1], [0, 0, 1, 1], [], []>} : vector<16x32xbf16>, vector<32x96xbf16>, vector<16x96xf32> -> vector<16x96xf32>
    %c0_16 = arith.constant 0 : index
    %c0_17 = arith.constant 0 : index
    %c0_18 = arith.constant 0 : index
    %39 = vector.load %arg4[%c0_16, %c0_17, %c0_18] : memref<2x1x96xf32, #tpu.memory_space<vmem>>, vector<1x1x96xf32>
    %40 = vector.shape_cast %39 : vector<1x1x96xf32> to vector<1x96xf32>
    %41 = vector.broadcast %40 : vector<1x96xf32> to vector<16x96xf32>
    %42 = arith.addf %38, %41 : vector<16x96xf32>
    %43 = arith.truncf %42 : vector<16x96xf32> to vector<16x96xbf16>
    %44 = vector.extract_strided_slice %43 {offsets = [0, 0], sizes = [16, 32], strides = [1, 1]} : vector<16x96xbf16> to vector<16x32xbf16>
    %45 = vector.shape_cast %44 : vector<16x32xbf16> to vector<16x4x8xbf16>
    %46 = vector.extract_strided_slice %43 {offsets = [0, 32], sizes = [16, 32], strides = [1, 1]} : vector<16x96xbf16> to vector<16x32xbf16>
    %47 = vector.shape_cast %46 : vector<16x32xbf16> to vector<16x4x8xbf16>
    %48 = vector.extract_strided_slice %43 {offsets = [0, 64], sizes = [16, 32], strides = [1, 1]} : vector<16x96xbf16> to vector<16x32xbf16>
    %49 = vector.shape_cast %48 : vector<16x32xbf16> to vector<16x4x8xbf16>
    "tpu.trace_start"() <{level = 10 : i32, message = "qhd,khd->hqk"}> : () -> ()
    %cst_19 = arith.constant dense<0.000000e+00> : vector<4x16x16xf32>
    %50 = tpu.matmul %45, %47, %cst_19 {dimension_numbers = #tpu.dot_dimension_numbers<[2], [2], [0], [0], [0, 1, 0, 0, 1, 0], [1], [1]>} : vector<16x4x8xbf16>, vector<16x4x8xbf16>, vector<4x16x16xf32> -> vector<4x16x16xf32>
    "tpu.trace_stop"() : () -> ()
    %51 = vector.shape_cast %0 : vector<16x16xf32> to vector<1x16x16xf32>
    %52 = vector.broadcast %51 : vector<1x16x16xf32> to vector<4x16x16xf32>
    %53 = arith.addf %50, %52 : vector<4x16x16xf32>
    %cst_20 = arith.constant dense<0xFF800000> : vector<4x16xf32>
    %54 = vector.multi_reduction <maximumf>, %53, %cst_20 [2] : vector<4x16x16xf32> to vector<4x16xf32>
    %55 = vector.shape_cast %54 : vector<4x16xf32> to vector<4x16x1xf32>
    %56 = vector.broadcast %55 : vector<4x16x1xf32> to vector<4x16x16xf32>
    %57 = arith.subf %53, %56 : vector<4x16x16xf32>
    %58 = math.exp %57 : vector<4x16x16xf32>
    %cst_21 = arith.constant dense<0.000000e+00> : vector<4x16xf32>
    %59 = vector.multi_reduction <add>, %58, %cst_21 [2] : vector<4x16x16xf32> to vector<4x16xf32>
    %60 = vector.shape_cast %59 : vector<4x16xf32> to vector<4x16x1xf32>
    %61 = tpu.reciprocal %60 {approx = true} : vector<4x16x1xf32> -> vector<4x16x1xf32>
    %62 = vector.broadcast %61 : vector<4x16x1xf32> to vector<4x16x16xf32>
    %63 = arith.mulf %58, %62 : vector<4x16x16xf32>
    %64 = arith.truncf %63 : vector<4x16x16xf32> to vector<4x16x16xbf16>
    "tpu.trace_start"() <{level = 10 : i32, message = "hqk,khd->qhd"}> : () -> ()
    %cst_22 = arith.constant dense<0.000000e+00> : vector<4x8x16xf32>
    %65 = tpu.matmul %49, %64, %cst_22 {dimension_numbers = #tpu.dot_dimension_numbers<[0], [2], [2], [1], [0, 1, 0, 2, 1, 1], [1], [0]>} : vector<16x4x8xbf16>, vector<4x16x16xbf16>, vector<4x8x16xf32> -> vector<4x8x16xf32>
    %66 = tpu.transpose %65, [2, 0, 1] : vector<4x8x16xf32> -> vector<16x4x8xf32>
    "tpu.trace_stop"() : () -> ()
    %67 = vector.shape_cast %66 : vector<16x4x8xf32> to vector<16x32xf32>
    %68 = arith.truncf %67 : vector<16x32xf32> to vector<16x32xbf16>
    %c0_23 = arith.constant 0 : index
    %c0_24 = arith.constant 0 : index
    %c0_25 = arith.constant 0 : index
    %69 = vector.load %arg5[%c0_23, %c0_24, %c0_25] : memref<2x32x32xbf16, #tpu.memory_space<vmem>>, vector<1x32x32xbf16>
    %70 = vector.shape_cast %69 : vector<1x32x32xbf16> to vector<32x32xbf16>
    %cst_26 = arith.constant dense<0.000000e+00> : vector<16x32xf32>
    %71 = tpu.matmul %68, %70, %cst_26 {dimension_numbers = #tpu.dot_dimension_numbers<[1], [0], [0], [1], [0, 0, 1, 1], [], []>} : vector<16x32xbf16>, vector<32x32xbf16>, vector<16x32xf32> -> vector<16x32xf32>
    %72 = vector.broadcast %29 : vector<1x32xf32> to vector<16x32xf32>
    %73 = arith.addf %71, %72 : vector<16x32xf32>
    %74 = arith.addf %26, %73 : vector<16x32xf32>
    %cst_27 = arith.constant dense<0.000000e+00> : vector<16xf32>
    %75 = vector.multi_reduction <add>, %74, %cst_27 [1] : vector<16x32xf32> to vector<16xf32>
    %76 = vector.shape_cast %75 : vector<16xf32> to vector<16x1xf32>
    %cst_28 = arith.constant 3.200000e+01 : f32
    %77 = vector.broadcast %cst_28 : f32 to vector<16x1xf32>
    %78 = arith.divf %76, %77 : vector<16x1xf32>
    %79 = vector.broadcast %78 : vector<16x1xf32> to vector<16x32xf32>
    %80 = arith.subf %74, %79 : vector<16x32xf32>
    %81 = arith.mulf %80, %80 : vector<16x32xf32>
    %cst_29 = arith.constant dense<0.000000e+00> : vector<16xf32>
    %82 = vector.multi_reduction <add>, %81, %cst_29 [1] : vector<16x32xf32> to vector<16xf32>
    %83 = vector.shape_cast %82 : vector<16xf32> to vector<16x1xf32>
    %cst_30 = arith.constant 3.200000e+01 : f32
    %84 = vector.broadcast %cst_30 : f32 to vector<16x1xf32>
    %85 = arith.divf %83, %84 : vector<16x1xf32>
    %86 = vector.broadcast %78 : vector<16x1xf32> to vector<16x32xf32>
    %87 = arith.subf %74, %86 : vector<16x32xf32>
    %cst_31 = arith.constant 9.99999996E-13 : f32
    %88 = vector.broadcast %cst_31 : f32 to vector<16x1xf32>
    %89 = arith.addf %85, %88 : vector<16x1xf32>
    %90 = math.rsqrt %89 : vector<16x1xf32>
    %91 = vector.broadcast %90 : vector<16x1xf32> to vector<16x32xf32>
    %92 = arith.mulf %87, %91 : vector<16x32xf32>
    %93 = vector.broadcast %30 : vector<1x32xf32> to vector<16x32xf32>
    %94 = arith.mulf %92, %93 : vector<16x32xf32>
    %95 = vector.broadcast %31 : vector<1x32xf32> to vector<16x32xf32>
    %96 = arith.addf %94, %95 : vector<16x32xf32>
    %97 = arith.truncf %96 : vector<16x32xf32> to vector<16x32xbf16>
    %c0_32 = arith.constant 0 : index
    %c0_33 = arith.constant 0 : index
    %c0_34 = arith.constant 0 : index
    %98 = vector.load %arg6[%c0_32, %c0_33, %c0_34] : memref<2x32x64xbf16, #tpu.memory_space<vmem>>, vector<1x32x64xbf16>
    %99 = vector.shape_cast %98 : vector<1x32x64xbf16> to vector<32x64xbf16>
    %cst_35 = arith.constant dense<0.000000e+00> : vector<16x64xf32>
    %100 = tpu.matmul %97, %99, %cst_35 {dimension_numbers = #tpu.dot_dimension_numbers<[1], [0], [0], [1], [0, 0, 1, 1], [], []>} : vector<16x32xbf16>, vector<32x64xbf16>, vector<16x64xf32> -> vector<16x64xf32>
    %c0_36 = arith.constant 0 : index
    %c0_37 = arith.constant 0 : index
    %c0_38 = arith.constant 0 : index
    %101 = vector.load %arg7[%c0_36, %c0_37, %c0_38] : memref<2x1x64xf32, #tpu.memory_space<vmem>>, vector<1x1x64xf32>
    %102 = vector.shape_cast %101 : vector<1x1x64xf32> to vector<1x64xf32>
    %103 = vector.broadcast %102 : vector<1x64xf32> to vector<16x64xf32>
    %104 = arith.addf %100, %103 : vector<16x64xf32>
    %105 = arith.mulf %104, %104 : vector<16x64xf32>
    %106 = arith.mulf %104, %105 : vector<16x64xf32>
    %cst_39 = arith.constant 4.471500e-02 : f32
    %107 = vector.broadcast %cst_39 : f32 to vector<16x64xf32>
    %108 = arith.mulf %107, %106 : vector<16x64xf32>
    %109 = arith.addf %104, %108 : vector<16x64xf32>
    %cst_40 = arith.constant 0.797884583 : f32
    %110 = vector.broadcast %cst_40 : f32 to vector<16x64xf32>
    %111 = arith.mulf %110, %109 : vector<16x64xf32>
    %112 = math.tanh %111 : vector<16x64xf32>
    %cst_41 = arith.constant 1.000000e+00 : f32
    %113 = vector.broadcast %cst_41 : f32 to vector<16x64xf32>
    %114 = arith.addf %113, %112 : vector<16x64xf32>
    %cst_42 = arith.constant 5.000000e-01 : f32
    %115 = vector.broadcast %cst_42 : f32 to vector<16x64xf32>
    %116 = arith.mulf %115, %114 : vector<16x64xf32>
    %117 = arith.mulf %104, %116 : vector<16x64xf32>
    %118 = arith.truncf %117 : vector<16x64xf32> to vector<16x64xbf16>
    %c0_43 = arith.constant 0 : index
    %c0_44 = arith.constant 0 : index
    %c0_45 = arith.constant 0 : index
    %119 = vector.load %arg8[%c0_43, %c0_44, %c0_45] : memref<2x64x32xbf16, #tpu.memory_space<vmem>>, vector<1x64x32xbf16>
    %120 = vector.shape_cast %119 : vector<1x64x32xbf16> to vector<64x32xbf16>
    %cst_46 = arith.constant dense<0.000000e+00> : vector<16x32xf32>
    %121 = tpu.matmul %118, %120, %cst_46 {dimension_numbers = #tpu.dot_dimension_numbers<[1], [0], [0], [1], [0, 0, 1, 1], [], []>} : vector<16x64xbf16>, vector<64x32xbf16>, vector<16x32xf32> -> vector<16x32xf32>
    %122 = vector.broadcast %34 : vector<1x32xf32> to vector<16x32xf32>
    %123 = arith.addf %121, %122 : vector<16x32xf32>
    %124 = arith.addf %96, %123 : vector<16x32xf32>
    %cst_47 = arith.constant dense<0.000000e+00> : vector<16xf32>
    %125 = vector.multi_reduction <add>, %124, %cst_47 [1] : vector<16x32xf32> to vector<16xf32>
    %126 = vector.shape_cast %125 : vector<16xf32> to vector<16x1xf32>
    %cst_48 = arith.constant 3.200000e+01 : f32
    %127 = vector.broadcast %cst_48 : f32 to vector<16x1xf32>
    %128 = arith.divf %126, %127 : vector<16x1xf32>
    %129 = vector.broadcast %128 : vector<16x1xf32> to vector<16x32xf32>
    %130 = arith.subf %124, %129 : vector<16x32xf32>
    %131 = arith.mulf %130, %130 : vector<16x32xf32>
    %cst_49 = arith.constant dense<0.000000e+00> : vector<16xf32>
    %132 = vector.multi_reduction <add>, %131, %cst_49 [1] : vector<16x32xf32> to vector<16xf32>
    %133 = vector.shape_cast %132 : vector<16xf32> to vector<16x1xf32>
    %cst_50 = arith.constant 3.200000e+01 : f32
    %134 = vector.broadcast %cst_50 : f32 to vector<16x1xf32>
    %135 = arith.divf %133, %134 : vector<16x1xf32>
    %136 = vector.broadcast %128 : vector<16x1xf32> to vector<16x32xf32>
    %137 = arith.subf %124, %136 : vector<16x32xf32>
    %cst_51 = arith.constant 9.99999996E-13 : f32
    %138 = vector.broadcast %cst_51 : f32 to vector<16x1xf32>
    %139 = arith.addf %135, %138 : vector<16x1xf32>
    %140 = math.rsqrt %139 : vector<16x1xf32>
    %141 = vector.broadcast %140 : vector<16x1xf32> to vector<16x32xf32>
    %142 = arith.mulf %137, %141 : vector<16x32xf32>
    %143 = vector.broadcast %32 : vector<1x32xf32> to vector<16x32xf32>
    %144 = arith.mulf %142, %143 : vector<16x32xf32>
    %145 = vector.broadcast %33 : vector<1x32xf32> to vector<16x32xf32>
    %146 = arith.addf %144, %145 : vector<16x32xf32>
    %c1 = arith.constant 1 : index
    %c0_52 = arith.constant 0 : index
    %c0_53 = arith.constant 0 : index
    %147 = vector.load %arg9[%c1, %c0_52, %c0_53] : memref<2x6x32xf32, #tpu.memory_space<vmem>>, vector<1x6x32xf32>
    %148 = vector.shape_cast %147 : vector<1x6x32xf32> to vector<6x32xf32>
    %149 = vector.extract_strided_slice %148 {offsets = [0, 0], sizes = [1, 32], strides = [1, 1]} : vector<6x32xf32> to vector<1x32xf32>
    %150 = vector.extract_strided_slice %148 {offsets = [1, 0], sizes = [1, 32], strides = [1, 1]} : vector<6x32xf32> to vector<1x32xf32>
    %151 = vector.extract_strided_slice %148 {offsets = [2, 0], sizes = [1, 32], strides = [1, 1]} : vector<6x32xf32> to vector<1x32xf32>
    %152 = vector.extract_strided_slice %148 {offsets = [3, 0], sizes = [1, 32], strides = [1, 1]} : vector<6x32xf32> to vector<1x32xf32>
    %153 = vector.extract_strided_slice %148 {offsets = [4, 0], sizes = [1, 32], strides = [1, 1]} : vector<6x32xf32> to vector<1x32xf32>
    %154 = vector.extract_strided_slice %148 {offsets = [5, 0], sizes = [1, 32], strides = [1, 1]} : vector<6x32xf32> to vector<1x32xf32>
    %155 = arith.truncf %146 : vector<16x32xf32> to vector<16x32xbf16>
    %c1_54 = arith.constant 1 : index
    %c0_55 = arith.constant 0 : index
    %c0_56 = arith.constant 0 : index
    %156 = vector.load %arg3[%c1_54, %c0_55, %c0_56] : memref<2x32x96xbf16, #tpu.memory_space<vmem>>, vector<1x32x96xbf16>
    %157 = vector.shape_cast %156 : vector<1x32x96xbf16> to vector<32x96xbf16>
    %cst_57 = arith.constant dense<0.000000e+00> : vector<16x96xf32>
    %158 = tpu.matmul %155, %157, %cst_57 {dimension_numbers = #tpu.dot_dimension_numbers<[1], [0], [0], [1], [0, 0, 1, 1], [], []>} : vector<16x32xbf16>, vector<32x96xbf16>, vector<16x96xf32> -> vector<16x96xf32>
    %c1_58 = arith.constant 1 : index
    %c0_59 = arith.constant 0 : index
    %c0_60 = arith.constant 0 : index
    %159 = vector.load %arg4[%c1_58, %c0_59, %c0_60] : memref<2x1x96xf32, #tpu.memory_space<vmem>>, vector<1x1x96xf32>
    %160 = vector.shape_cast %159 : vector<1x1x96xf32> to vector<1x96xf32>
    %161 = vector.broadcast %160 : vector<1x96xf32> to vector<16x96xf32>
    %162 = arith.addf %158, %161 : vector<16x96xf32>
    %163 = arith.truncf %162 : vector<16x96xf32> to vector<16x96xbf16>
    %164 = vector.extract_strided_slice %163 {offsets = [0, 0], sizes = [16, 32], strides = [1, 1]} : vector<16x96xbf16> to vector<16x32xbf16>
    %165 = vector.shape_cast %164 : vector<16x32xbf16> to vector<16x4x8xbf16>
    %166 = vector.extract_strided_slice %163 {offsets = [0, 32], sizes = [16, 32], strides = [1, 1]} : vector<16x96xbf16> to vector<16x32xbf16>
    %167 = vector.shape_cast %166 : vector<16x32xbf16> to vector<16x4x8xbf16>
    %168 = vector.extract_strided_slice %163 {offsets = [0, 64], sizes = [16, 32], strides = [1, 1]} : vector<16x96xbf16> to vector<16x32xbf16>
    %169 = vector.shape_cast %168 : vector<16x32xbf16> to vector<16x4x8xbf16>
    "tpu.trace_start"() <{level = 10 : i32, message = "qhd,khd->hqk"}> : () -> ()
    %cst_61 = arith.constant dense<0.000000e+00> : vector<4x16x16xf32>
    %170 = tpu.matmul %165, %167, %cst_61 {dimension_numbers = #tpu.dot_dimension_numbers<[2], [2], [0], [0], [0, 1, 0, 0, 1, 0], [1], [1]>} : vector<16x4x8xbf16>, vector<16x4x8xbf16>, vector<4x16x16xf32> -> vector<4x16x16xf32>
    "tpu.trace_stop"() : () -> ()
    %171 = vector.shape_cast %0 : vector<16x16xf32> to vector<1x16x16xf32>
    %172 = vector.broadcast %171 : vector<1x16x16xf32> to vector<4x16x16xf32>
    %173 = arith.addf %170, %172 : vector<4x16x16xf32>
    %cst_62 = arith.constant dense<0xFF800000> : vector<4x16xf32>
    %174 = vector.multi_reduction <maximumf>, %173, %cst_62 [2] : vector<4x16x16xf32> to vector<4x16xf32>
    %175 = vector.shape_cast %174 : vector<4x16xf32> to vector<4x16x1xf32>
    %176 = vector.broadcast %175 : vector<4x16x1xf32> to vector<4x16x16xf32>
    %177 = arith.subf %173, %176 : vector<4x16x16xf32>
    %178 = math.exp %177 : vector<4x16x16xf32>
    %cst_63 = arith.constant dense<0.000000e+00> : vector<4x16xf32>
    %179 = vector.multi_reduction <add>, %178, %cst_63 [2] : vector<4x16x16xf32> to vector<4x16xf32>
    %180 = vector.shape_cast %179 : vector<4x16xf32> to vector<4x16x1xf32>
    %181 = tpu.reciprocal %180 {approx = true} : vector<4x16x1xf32> -> vector<4x16x1xf32>
    %182 = vector.broadcast %181 : vector<4x16x1xf32> to vector<4x16x16xf32>
    %183 = arith.mulf %178, %182 : vector<4x16x16xf32>
    %184 = arith.truncf %183 : vector<4x16x16xf32> to vector<4x16x16xbf16>
    "tpu.trace_start"() <{level = 10 : i32, message = "hqk,khd->qhd"}> : () -> ()
    %cst_64 = arith.constant dense<0.000000e+00> : vector<4x8x16xf32>
    %185 = tpu.matmul %169, %184, %cst_64 {dimension_numbers = #tpu.dot_dimension_numbers<[0], [2], [2], [1], [0, 1, 0, 2, 1, 1], [1], [0]>} : vector<16x4x8xbf16>, vector<4x16x16xbf16>, vector<4x8x16xf32> -> vector<4x8x16xf32>
    %186 = tpu.transpose %185, [2, 0, 1] : vector<4x8x16xf32> -> vector<16x4x8xf32>
    "tpu.trace_stop"() : () -> ()
    %187 = vector.shape_cast %186 : vector<16x4x8xf32> to vector<16x32xf32>
    %188 = arith.truncf %187 : vector<16x32xf32> to vector<16x32xbf16>
    %c1_65 = arith.constant 1 : index
    %c0_66 = arith.constant 0 : index
    %c0_67 = arith.constant 0 : index
    %189 = vector.load %arg5[%c1_65, %c0_66, %c0_67] : memref<2x32x32xbf16, #tpu.memory_space<vmem>>, vector<1x32x32xbf16>
    %190 = vector.shape_cast %189 : vector<1x32x32xbf16> to vector<32x32xbf16>
    %cst_68 = arith.constant dense<0.000000e+00> : vector<16x32xf32>
    %191 = tpu.matmul %188, %190, %cst_68 {dimension_numbers = #tpu.dot_dimension_numbers<[1], [0], [0], [1], [0, 0, 1, 1], [], []>} : vector<16x32xbf16>, vector<32x32xbf16>, vector<16x32xf32> -> vector<16x32xf32>
    %192 = vector.broadcast %149 : vector<1x32xf32> to vector<16x32xf32>
    %193 = arith.addf %191, %192 : vector<16x32xf32>
    %194 = arith.addf %146, %193 : vector<16x32xf32>
    %cst_69 = arith.constant dense<0.000000e+00> : vector<16xf32>
    %195 = vector.multi_reduction <add>, %194, %cst_69 [1] : vector<16x32xf32> to vector<16xf32>
    %196 = vector.shape_cast %195 : vector<16xf32> to vector<16x1xf32>
    %cst_70 = arith.constant 3.200000e+01 : f32
    %197 = vector.broadcast %cst_70 : f32 to vector<16x1xf32>
    %198 = arith.divf %196, %197 : vector<16x1xf32>
    %199 = vector.broadcast %198 : vector<16x1xf32> to vector<16x32xf32>
    %200 = arith.subf %194, %199 : vector<16x32xf32>
    %201 = arith.mulf %200, %200 : vector<16x32xf32>
    %cst_71 = arith.constant dense<0.000000e+00> : vector<16xf32>
    %202 = vector.multi_reduction <add>, %201, %cst_71 [1] : vector<16x32xf32> to vector<16xf32>
    %203 = vector.shape_cast %202 : vector<16xf32> to vector<16x1xf32>
    %cst_72 = arith.constant 3.200000e+01 : f32
    %204 = vector.broadcast %cst_72 : f32 to vector<16x1xf32>
    %205 = arith.divf %203, %204 : vector<16x1xf32>
    %206 = vector.broadcast %198 : vector<16x1xf32> to vector<16x32xf32>
    %207 = arith.subf %194, %206 : vector<16x32xf32>
    %cst_73 = arith.constant 9.99999996E-13 : f32
    %208 = vector.broadcast %cst_73 : f32 to vector<16x1xf32>
    %209 = arith.addf %205, %208 : vector<16x1xf32>
    %210 = math.rsqrt %209 : vector<16x1xf32>
    %211 = vector.broadcast %210 : vector<16x1xf32> to vector<16x32xf32>
    %212 = arith.mulf %207, %211 : vector<16x32xf32>
    %213 = vector.broadcast %150 : vector<1x32xf32> to vector<16x32xf32>
    %214 = arith.mulf %212, %213 : vector<16x32xf32>
    %215 = vector.broadcast %151 : vector<1x32xf32> to vector<16x32xf32>
    %216 = arith.addf %214, %215 : vector<16x32xf32>
    %217 = arith.truncf %216 : vector<16x32xf32> to vector<16x32xbf16>
    %c1_74 = arith.constant 1 : index
    %c0_75 = arith.constant 0 : index
    %c0_76 = arith.constant 0 : index
    %218 = vector.load %arg6[%c1_74, %c0_75, %c0_76] : memref<2x32x64xbf16, #tpu.memory_space<vmem>>, vector<1x32x64xbf16>
    %219 = vector.shape_cast %218 : vector<1x32x64xbf16> to vector<32x64xbf16>
    %cst_77 = arith.constant dense<0.000000e+00> : vector<16x64xf32>
    %220 = tpu.matmul %217, %219, %cst_77 {dimension_numbers = #tpu.dot_dimension_numbers<[1], [0], [0], [1], [0, 0, 1, 1], [], []>} : vector<16x32xbf16>, vector<32x64xbf16>, vector<16x64xf32> -> vector<16x64xf32>
    %c1_78 = arith.constant 1 : index
    %c0_79 = arith.constant 0 : index
    %c0_80 = arith.constant 0 : index
    %221 = vector.load %arg7[%c1_78, %c0_79, %c0_80] : memref<2x1x64xf32, #tpu.memory_space<vmem>>, vector<1x1x64xf32>
    %222 = vector.shape_cast %221 : vector<1x1x64xf32> to vector<1x64xf32>
    %223 = vector.broadcast %222 : vector<1x64xf32> to vector<16x64xf32>
    %224 = arith.addf %220, %223 : vector<16x64xf32>
    %225 = arith.mulf %224, %224 : vector<16x64xf32>
    %226 = arith.mulf %224, %225 : vector<16x64xf32>
    %cst_81 = arith.constant 4.471500e-02 : f32
    %227 = vector.broadcast %cst_81 : f32 to vector<16x64xf32>
    %228 = arith.mulf %227, %226 : vector<16x64xf32>
    %229 = arith.addf %224, %228 : vector<16x64xf32>
    %cst_82 = arith.constant 0.797884583 : f32
    %230 = vector.broadcast %cst_82 : f32 to vector<16x64xf32>
    %231 = arith.mulf %230, %229 : vector<16x64xf32>
    %232 = math.tanh %231 : vector<16x64xf32>
    %cst_83 = arith.constant 1.000000e+00 : f32
    %233 = vector.broadcast %cst_83 : f32 to vector<16x64xf32>
    %234 = arith.addf %233, %232 : vector<16x64xf32>
    %cst_84 = arith.constant 5.000000e-01 : f32
    %235 = vector.broadcast %cst_84 : f32 to vector<16x64xf32>
    %236 = arith.mulf %235, %234 : vector<16x64xf32>
    %237 = arith.mulf %224, %236 : vector<16x64xf32>
    %238 = arith.truncf %237 : vector<16x64xf32> to vector<16x64xbf16>
    %c1_85 = arith.constant 1 : index
    %c0_86 = arith.constant 0 : index
    %c0_87 = arith.constant 0 : index
    %239 = vector.load %arg8[%c1_85, %c0_86, %c0_87] : memref<2x64x32xbf16, #tpu.memory_space<vmem>>, vector<1x64x32xbf16>
    %240 = vector.shape_cast %239 : vector<1x64x32xbf16> to vector<64x32xbf16>
    %cst_88 = arith.constant dense<0.000000e+00> : vector<16x32xf32>
    %241 = tpu.matmul %238, %240, %cst_88 {dimension_numbers = #tpu.dot_dimension_numbers<[1], [0], [0], [1], [0, 0, 1, 1], [], []>} : vector<16x64xbf16>, vector<64x32xbf16>, vector<16x32xf32> -> vector<16x32xf32>
    %242 = vector.broadcast %154 : vector<1x32xf32> to vector<16x32xf32>
    %243 = arith.addf %241, %242 : vector<16x32xf32>
    %244 = arith.addf %216, %243 : vector<16x32xf32>
    %cst_89 = arith.constant dense<0.000000e+00> : vector<16xf32>
    %245 = vector.multi_reduction <add>, %244, %cst_89 [1] : vector<16x32xf32> to vector<16xf32>
    %246 = vector.shape_cast %245 : vector<16xf32> to vector<16x1xf32>
    %cst_90 = arith.constant 3.200000e+01 : f32
    %247 = vector.broadcast %cst_90 : f32 to vector<16x1xf32>
    %248 = arith.divf %246, %247 : vector<16x1xf32>
    %249 = vector.broadcast %248 : vector<16x1xf32> to vector<16x32xf32>
    %250 = arith.subf %244, %249 : vector<16x32xf32>
    %251 = arith.mulf %250, %250 : vector<16x32xf32>
    %cst_91 = arith.constant dense<0.000000e+00> : vector<16xf32>
    %252 = vector.multi_reduction <add>, %251, %cst_91 [1] : vector<16x32xf32> to vector<16xf32>
    %253 = vector.shape_cast %252 : vector<16xf32> to vector<16x1xf32>
    %cst_92 = arith.constant 3.200000e+01 : f32
    %254 = vector.broadcast %cst_92 : f32 to vector<16x1xf32>
    %255 = arith.divf %253, %254 : vector<16x1xf32>
    %256 = vector.broadcast %248 : vector<16x1xf32> to vector<16x32xf32>
    %257 = arith.subf %244, %256 : vector<16x32xf32>
    %cst_93 = arith.constant 9.99999996E-13 : f32
    %258 = vector.broadcast %cst_93 : f32 to vector<16x1xf32>
    %259 = arith.addf %255, %258 : vector<16x1xf32>
    %260 = math.rsqrt %259 : vector<16x1xf32>
    %261 = vector.broadcast %260 : vector<16x1xf32> to vector<16x32xf32>
    %262 = arith.mulf %257, %261 : vector<16x32xf32>
    %263 = vector.broadcast %152 : vector<1x32xf32> to vector<16x32xf32>
    %264 = arith.mulf %262, %263 : vector<16x32xf32>
    %265 = vector.broadcast %153 : vector<1x32xf32> to vector<16x32xf32>
    %266 = arith.addf %264, %265 : vector<16x32xf32>
    %c0_94 = arith.constant 0 : index
    %c0_95 = arith.constant 0 : index
    %c0_96 = arith.constant 0 : index
    %267 = vector.load %arg10[%c0_94, %c0_95, %c0_96] : memref<2x32x32xbf16, #tpu.memory_space<vmem>>, vector<2x32x32xbf16>
    %c0_97 = arith.constant 0 : index
    %c0_98 = arith.constant 0 : index
    %268 = vector.load %arg12[%c0_97, %c0_98] : memref<4x32xf32, #tpu.memory_space<vmem>>, vector<4x32xf32>
    %269 = vector.extract_strided_slice %268 {offsets = [0, 0], sizes = [1, 32], strides = [1, 1]} : vector<4x32xf32> to vector<1x32xf32>
    %270 = vector.extract_strided_slice %268 {offsets = [1, 0], sizes = [1, 32], strides = [1, 1]} : vector<4x32xf32> to vector<1x32xf32>
    %271 = vector.extract_strided_slice %268 {offsets = [2, 0], sizes = [1, 32], strides = [1, 1]} : vector<4x32xf32> to vector<1x32xf32>
    %272 = vector.extract_strided_slice %268 {offsets = [3, 0], sizes = [1, 32], strides = [1, 1]} : vector<4x32xf32> to vector<1x32xf32>
    %273 = vector.extract_strided_slice %266 {offsets = [0, 0], sizes = [1, 32], strides = [1, 1]} : vector<16x32xf32> to vector<1x32xf32>
    %274 = vector.extract_strided_slice %266 {offsets = [8, 0], sizes = [1, 32], strides = [1, 1]} : vector<16x32xf32> to vector<1x32xf32>
    %275 = tpu.concatenate %273, %274 in 0 : vector<1x32xf32>, vector<1x32xf32> -> vector<2x32xf32>
    %276 = arith.truncf %275 : vector<2x32xf32> to vector<2x32xbf16>
    %277 = vector.extract_strided_slice %267 {offsets = [0, 0, 0], sizes = [1, 32, 32], strides = [1, 1, 1]} : vector<2x32x32xbf16> to vector<1x32x32xbf16>
    %278 = vector.shape_cast %277 : vector<1x32x32xbf16> to vector<32x32xbf16>
    %cst_99 = arith.constant dense<0.000000e+00> : vector<2x32xf32>
    %279 = tpu.matmul %276, %278, %cst_99 {dimension_numbers = #tpu.dot_dimension_numbers<[1], [0], [0], [1], [0, 0, 1, 1], [], []>} : vector<2x32xbf16>, vector<32x32xbf16>, vector<2x32xf32> -> vector<2x32xf32>
    %280 = vector.broadcast %269 : vector<1x32xf32> to vector<2x32xf32>
    %281 = arith.addf %279, %280 : vector<2x32xf32>
    %282 = math.tanh %281 : vector<2x32xf32>
    %cst_100 = arith.constant dense<0.000000e+00> : vector<2xf32>
    %283 = vector.multi_reduction <add>, %282, %cst_100 [1] : vector<2x32xf32> to vector<2xf32>
    %284 = vector.shape_cast %283 : vector<2xf32> to vector<2x1xf32>
    %cst_101 = arith.constant 3.200000e+01 : f32
    %285 = vector.broadcast %cst_101 : f32 to vector<2x1xf32>
    %286 = arith.divf %284, %285 : vector<2x1xf32>
    %287 = vector.broadcast %286 : vector<2x1xf32> to vector<2x32xf32>
    %288 = arith.subf %282, %287 : vector<2x32xf32>
    %289 = arith.mulf %288, %288 : vector<2x32xf32>
    %cst_102 = arith.constant dense<0.000000e+00> : vector<2xf32>
    %290 = vector.multi_reduction <add>, %289, %cst_102 [1] : vector<2x32xf32> to vector<2xf32>
    %291 = vector.shape_cast %290 : vector<2xf32> to vector<2x1xf32>
    %cst_103 = arith.constant 3.200000e+01 : f32
    %292 = vector.broadcast %cst_103 : f32 to vector<2x1xf32>
    %293 = arith.divf %291, %292 : vector<2x1xf32>
    %294 = vector.broadcast %286 : vector<2x1xf32> to vector<2x32xf32>
    %295 = arith.subf %282, %294 : vector<2x32xf32>
    %cst_104 = arith.constant 9.99999974E-6 : f32
    %296 = vector.broadcast %cst_104 : f32 to vector<2x1xf32>
    %297 = arith.addf %293, %296 : vector<2x1xf32>
    %298 = math.rsqrt %297 : vector<2x1xf32>
    %299 = vector.broadcast %298 : vector<2x1xf32> to vector<2x32xf32>
    %300 = arith.mulf %295, %299 : vector<2x32xf32>
    %301 = vector.broadcast %270 : vector<1x32xf32> to vector<2x32xf32>
    %302 = arith.mulf %300, %301 : vector<2x32xf32>
    %303 = vector.broadcast %271 : vector<1x32xf32> to vector<2x32xf32>
    %304 = arith.addf %302, %303 : vector<2x32xf32>
    %305 = arith.truncf %304 : vector<2x32xf32> to vector<2x32xbf16>
    %306 = vector.extract_strided_slice %267 {offsets = [1, 0, 0], sizes = [1, 32, 32], strides = [1, 1, 1]} : vector<2x32x32xbf16> to vector<1x32x32xbf16>
    %307 = vector.shape_cast %306 : vector<1x32x32xbf16> to vector<32x32xbf16>
    %cst_105 = arith.constant dense<0.000000e+00> : vector<2x32xf32>
    %308 = tpu.matmul %305, %307, %cst_105 {dimension_numbers = #tpu.dot_dimension_numbers<[1], [0], [0], [1], [0, 0, 1, 1], [], []>} : vector<2x32xbf16>, vector<32x32xbf16>, vector<2x32xf32> -> vector<2x32xf32>
    %309 = vector.broadcast %272 : vector<1x32xf32> to vector<2x32xf32>
    %310 = arith.addf %308, %309 : vector<2x32xf32>
    %cst_106 = arith.constant 0.000000e+00 : f32
    %311 = vector.broadcast %cst_106 : f32 to vector<2x32xf32>
    %312 = arith.maximumf %310, %311 : vector<2x32xf32>
    %313 = arith.truncf %312 : vector<2x32xf32> to vector<2x32xbf16>
    %c0_107 = arith.constant 0 : index
    %c0_108 = arith.constant 0 : index
    %314 = vector.load %arg11[%c0_107, %c0_108] : memref<32x128xbf16, #tpu.memory_space<vmem>>, vector<32x128xbf16>
    %cst_109 = arith.constant dense<0.000000e+00> : vector<2x128xf32>
    %315 = tpu.matmul %313, %314, %cst_109 {dimension_numbers = #tpu.dot_dimension_numbers<[1], [0], [0], [1], [0, 0, 1, 1], [], []>} : vector<2x32xbf16>, vector<32x128xbf16>, vector<2x128xf32> -> vector<2x128xf32>
    %c0_110 = arith.constant 0 : index
    %c0_111 = arith.constant 0 : index
    %316 = vector.load %arg13[%c0_110, %c0_111] : memref<1x128xf32, #tpu.memory_space<vmem>>, vector<1x128xf32>
    %317 = vector.broadcast %316 : vector<1x128xf32> to vector<2x128xf32>
    %318 = arith.addf %315, %317 : vector<2x128xf32>
    %c0_112 = arith.constant 0 : index
    %c0_113 = arith.constant 0 : index
    %319 = vector.load %arg14[%c0_112, %c0_113] : memref<2x128xf32, #tpu.memory_space<vmem>>, vector<2x128xf32>
    tpu.vector_store %arg14[%c0_112, %c0_113], %318 {strides = array<i32>} : memref<2x128xf32, #tpu.memory_space<vmem>>, vector<2x128xf32>,
    return
  }
}

</mosaic_0001>

<bundles_post_ra>
// kernel: tpu_custom_call.1
= control target key start
LH: loop header
LB: loop body
LE: loop exit
PB: predicated region body
PF: predicated region fallthrough
CT: control target
= control target key end

     0   :  { %19 = vsyncpa [#allocation3], 0  ;;  %s4701_s0 = inlined_call_operand.hbm [shape: f32[16,16], index: 0, kind: input, shape index: {}]   ;;  %s4702_s1 = inlined_call_operand.hbm [shape: f32[16,32], index: 1, kind: input, shape index: {}]   ;;  %s4703_s2 = inlined_call_operand.hbm [shape: f32[2,32], index: 2, kind: input, shape index: {}]   ;;  %s4704_s3 = inlined_call_operand.vmem [shape: bf16[2,32,96], index: 3, kind: input, shape index: {}]   ;;  %s4705_s4 = inlined_call_operand.hbm [shape: f32[2,1,96], index: 4, kind: input, shape index: {}]   ;;  %s4706_s5 = inlined_call_operand.vmem [shape: bf16[2,32,32], index: 5, kind: input, shape index: {}]   ;;  %s4707_s6 = inlined_call_operand.vmem [shape: bf16[2,32,64], index: 6, kind: input, shape index: {}]   ;;  %s4708_s7 = inlined_call_operand.hbm [shape: f32[2,1,64], index: 7, kind: input, shape index: {}]   ;;  %s4709_s8 = inlined_call_operand.vmem [shape: bf16[2,64,32], index: 8, kind: input, shape index: {}]   ;;  %s4710_s9 = inlined_call_operand.vmem [shape: f32[2,6,32], index: 9, kind: input, shape index: {}]   ;;  %s4711_s10 = inlined_call_operand.vmem [shape: bf16[2,32,32], index: 10, kind: input, shape index: {}]   ;;  %s4712_s11 = inlined_call_operand.hbm [shape: bf16[32,128], index: 11, kind: input, shape index: {}]   ;;  %s4713_s12 = inlined_call_operand.vmem [shape: f32[4,32], index: 12, kind: input, shape index: {}]   ;;  %s4714_s13 = inlined_call_operand.vmem [shape: f32[1,128], index: 13, kind: input, shape index: {}]   ;;  %s4715_s14 = inlined_call_operand.hbm [shape: f32[2,128], index: 14, kind: output, shape index: {}]  }
   0x1   :  { %20 = vsyncpa [#allocation6], 0 }
   0x2   :  { %21 = vsyncpa [#allocation9], 0 }
   0x3   :  { %22 = vsyncpa [#allocation12], 0 }
   0x4   :  { %23 = vsyncpa [#allocation4], 0  ;;  %s3991_s29 = smov [#allocation5]   ;;  %s3992_s15 = smov [#allocation8]  }
   0x5   :  { %s41_s30 = sshll.u32 %s3991_s29, 4  ;;  %s65_s16 = sshll.u32 %s3992_s15, 4  ;;  %s42_s30 = int_to_ptr.vmem [resolvable:$true] %s41_s30  ;;  %s4088_s16 = int_to_ptr.vmem [resolvable:$true] %s65_s16 }
   0x6   :  { %s3827_s19 = scalar_lea.hbm %s4702_s1, 256 }
   0x7   :  { %p3828_p0 = scmp.ne.s32.totalorder %s4702_s1, %s3827_s19  ;;  %p3831_p1 = scmp.lt.u32.totalorder %s3827_s19, %s4702_s1 }
   0x9   :  { %p3833_p2 = pnand %p3831_p1, %p3828_p0 }
   0xb   :  { %3836 = shalt.err (!%p3833_p2)
}
   0xc   :  { %s3837_s24 = scalar_lea.vmem %s42_s30, 256  ;;  %p3842_p4 = scmp.lt.s32.totalorder %s42_s30, %s42_s30 }
   0xd   :  { %p3838_p3 = scmp.ne.s32.totalorder %s42_s30, %s3837_s24  ;;  %p3843_p5 = scmp.lt.s32.totalorder %s3837_s24, %s3837_s24 }
   0xf   :  { %p3844_p6 = por %p3843_p5, %p3842_p4 }
  0x11   :  { %p3845_p7 = pnand %p3844_p6, %p3838_p3 }
  0x13   :  { %3848 = shalt.err (!%p3845_p7)
}
  0x14   :  { %s4716_s25 = smov 128   ;;  %s3994_s26 = smov 8  }
  0x15   :  { %47 = dma.hbm_to_vmem [thread:$0]  %s4702_s1, 256, %s42_s30, [#allocation6], %s4716_s25, %s4716_s25, %s3994_s26  }
  0x16   :  { %s3849_s17 = scalar_lea.hbm %s4705_s4, 32 }
  0x17   :  { %p3850_p8 = scmp.ne.s32.totalorder %s4705_s4, %s3849_s17  ;;  %p3853_p9 = scmp.lt.u32.totalorder %s3849_s17, %s4705_s4 }
  0x19   :  { %p3855_p10 = pnand %p3853_p9, %p3850_p8 }
  0x1b   :  { %3858 = shalt.err (!%p3855_p10)
}
  0x1c   :  { %s3859_s22 = scalar_lea.vmem %s4088_s16, 32  ;;  %p3864_p12 = scmp.lt.s32.totalorder %s4088_s16, %s4088_s16 }
  0x1d   :  { %p3860_p11 = scmp.ne.s32.totalorder %s4088_s16, %s3859_s22  ;;  %p3865_p13 = scmp.lt.s32.totalorder %s3859_s22, %s3859_s22 }
  0x1f   :  { %p3866_p0 = por %p3865_p13, %p3864_p12 }
  0x21   :  { %p3867_p1 = pnand %p3866_p0, %p3860_p11 }
  0x23   :  { %3870 = shalt.err (!%p3867_p1)
}
  0x24   :  { %s3995_s1 = smov 16   ;;  %s3996_s30 = smov 1  }
  0x25   :  { %71 = dma.hbm_to_vmem [thread:$0]  %s4705_s4, 32, %s4088_s16, [#allocation9], %s3995_s1, %s3995_s1, %s3996_s30  }
  0x26   :  { %s3997_s27 = smov [#allocation2]   ;;  %s3998_s29 = smov [#allocation7]  }
  0x27   :  { %s29_s28 = sshll.u32 %s3997_s27, 4  ;;  %s54_s15 = sshll.u32 %s3998_s29, 4  ;;  %s30_s28 = int_to_ptr.vmem [resolvable:$true] %s29_s28  ;;  %s55_s15 = int_to_ptr.vmem [resolvable:$true] %s54_s15 }
  0x28   :  { %s3871_s19 = scalar_lea.hbm %s4701_s0, 256 }
  0x29   :  { %p3872_p2 = scmp.ne.s32.totalorder %s4701_s0, %s3871_s19  ;;  %p3875_p3 = scmp.lt.u32.totalorder %s3871_s19, %s4701_s0 }
  0x2b   :  { %p3877_p4 = pnand %p3875_p3, %p3872_p2 }
  0x2d   :  { %3880 = shalt.err (!%p3877_p4)
}
  0x2e   :  { %s3881_s4 = scalar_lea.vmem %s30_s28, 256  ;;  %p3886_p6 = scmp.lt.s32.totalorder %s30_s28, %s30_s28 }
  0x2f   :  { %p3882_p5 = scmp.ne.s32.totalorder %s30_s28, %s3881_s4  ;;  %p3887_p7 = scmp.lt.s32.totalorder %s3881_s4, %s3881_s4 }
  0x31   :  { %p3888_p8 = por %p3887_p7, %p3886_p6 }
  0x33   :  { %p3889_p9 = pnand %p3888_p8, %p3882_p5 }
  0x35   :  { %3892 = shalt.err (!%p3889_p9)
}
  0x36   :  { %s4717_s16 = smov 128   ;;  %s3893_s25 = scalar_lea.hbm %s4703_s2, 32 }
  0x37   :  { %35 = dma.hbm_to_vmem [thread:$0]  %s4701_s0, 256, %s30_s28, [#allocation3], %s4717_s16, %s4717_s16, %s3994_s26  }
  0x38   :  { %p3894_p10 = scmp.ne.s32.totalorder %s4703_s2, %s3893_s25  ;;  %p3897_p11 = scmp.lt.u32.totalorder %s3893_s25, %s4703_s2 }
  0x3a   :  { %p3899_p12 = pnand %p3897_p11, %p3894_p10 }
  0x3c   :  { %3902 = shalt.err (!%p3899_p12)
}
  0x3d   :  { %s3903_s21 = scalar_lea.vmem %s55_s15, 32  ;;  %p3908_p0 = scmp.lt.s32.totalorder %s55_s15, %s55_s15 }
  0x3e   :  { %p3904_p13 = scmp.ne.s32.totalorder %s55_s15, %s3903_s21  ;;  %p3909_p1 = scmp.lt.s32.totalorder %s3903_s21, %s3903_s21 }
  0x40   :  { %p3910_p2 = por %p3909_p1, %p3908_p0 }
  0x42   :  { %p3911_p3 = pnand %p3910_p2, %p3904_p13 }
  0x44   :  { %3914 = shalt.err (!%p3911_p3)
}
  0x45   :  { %57 = dma.hbm_to_vmem [thread:$0]  %s4703_s2, 32, %s55_s15, [#allocation6]  }
  0x46   :  { %s3999_s22 = smov [#allocation10]   ;;  %s4000_s16 = smov [#allocation11]  }
  0x47   :  { %s81_s4 = sshll.u32 %s3999_s22, 4  ;;  %s99_s23 = sshll.u32 %s4000_s16, 4  ;;  %s82_s4 = int_to_ptr.vmem [resolvable:$true] %s81_s4  ;;  %s4152_s23 = int_to_ptr.vmem [resolvable:$true] %s99_s23 }
  0x48   :  { %s3915_s29 = scalar_lea.hbm %s4708_s7, 32 }
  0x49   :  { %p3916_p4 = scmp.ne.s32.totalorder %s4708_s7, %s3915_s29  ;;  %p3919_p5 = scmp.lt.u32.totalorder %s3915_s29, %s4708_s7 }
  0x4b   :  { %p3921_p6 = pnand %p3919_p5, %p3916_p4 }
  0x4d   :  { %3924 = shalt.err (!%p3921_p6)
}
  0x4e   :  { %s3925_s2 = scalar_lea.vmem %s82_s4, 32  ;;  %p3930_p8 = scmp.lt.s32.totalorder %s82_s4, %s82_s4 }
  0x4f   :  { %p3926_p7 = scmp.ne.s32.totalorder %s82_s4, %s3925_s2  ;;  %p3931_p9 = scmp.lt.s32.totalorder %s3925_s2, %s3925_s2 }
  0x51   :  { %p3932_p10 = por %p3931_p9, %p3930_p8 }
  0x53   :  { %p3933_p11 = pnand %p3932_p10, %p3926_p7 }
  0x55   :  { %3936 = shalt.err (!%p3933_p11)
}
  0x56   :  { %87 = dma.hbm_to_vmem [thread:$0]  %s4708_s7, 32, %s82_s4, [#allocation9], %s3995_s1, %s3995_s1, %s3996_s30  }
  0x57   :  { %s3937_s28 = scalar_lea.hbm %s4712_s11, 256 }
  0x58   :  { %p3938_p12 = scmp.ne.s32.totalorder %s4712_s11, %s3937_s28  ;;  %p3941_p13 = scmp.lt.u32.totalorder %s3937_s28, %s4712_s11 }
  0x5a   :  { %p3943_p0 = pnand %p3941_p13, %p3938_p12 }
  0x5c   :  { %3946 = shalt.err (!%p3943_p0)
}
  0x5d   :  { %s3947_s29 = scalar_lea.vmem %s4152_s23, 256  ;;  %p3952_p2 = scmp.lt.s32.totalorder %s4152_s23, %s4152_s23 }
  0x5e   :  { %p3948_p1 = scmp.ne.s32.totalorder %s4152_s23, %s3947_s29  ;;  %p3953_p3 = scmp.lt.s32.totalorder %s3947_s29, %s3947_s29 }
  0x60   :  { %p3954_p4 = por %p3953_p3, %p3952_p2 }
  0x62   :  { %p3955_p5 = pnand %p3954_p4, %p3948_p1 }
  0x64   :  { %3958 = shalt.err (!%p3955_p5)
}
  0x65   :  { %s4001_s7 = smov 64   ;;  %s4002_s30 = smov 4  }
  0x66   :  { %105 = dma.hbm_to_vmem [thread:$0]  %s4712_s11, 256, %s4152_s23, [#allocation12], %s4001_s7, %s4001_s7, %s4002_s30  }
  0x67   :  { %3981 = dma.done.wait [#allocation3], 256  }
  0x68   :  { %3982 = vsyncadd [#allocation3], 4294967040 }
  0x69   :  { %3983 = dma.done.wait [#allocation6], 288  }
  0x6a   :  { %3984 = vsyncadd [#allocation6], 4294967008 }
  0x6b   :  { %3985 = dma.done.wait [#allocation9], 64  }
  0x6c   :  { %3986 = vsyncadd [#allocation9], 4294967232 }
  0x6d   :  { %3987 = dma.done.wait [#allocation12], 256  }
  0x6e   :  { %3988 = vsyncadd [#allocation12], 4294967040  ;;  %vm134_vm0 = vcmask 261120   ;;  %v131_v0 = vld [vmem:[#allocation5] sm:$0xff]  ;;  %v132_v1 = vld [vmem:[#allocation5 + $0x8] sm:$0xff]  ;;  %v4003_v15 = vmov 0.0   ;;  %v162_v21 = vlaneseq }
  0x6f   :  { %v135_v2 = vsel %vm134_vm0, %v131_v0, 0.0  ;;  %v138_v3 = vsel %vm134_vm0, %v132_v1, 0.0  ;;  %v3703_v14 = vld [vmem:[%s4704_s3] sm:$0xff]   ;;  %3458 = vmatprep.subr.bf16.mxu0 %v4003_v15  ;;  %vm4004_vm1 = vmmov 0   ;;  %v3704_v16 = vld [vmem:[%s4704_s3 + $0x8] sm:$0xff]   ;;  %3466 = vmatprep.subr.bf16.mxu1 %v4003_v15  ;;  %s4005_s19 = smov 112  }
  0x70   :  { %136 = vadd.xlane.f32.xlu0 %v135_v2  ;;  %3462 = vmatprep.mubr.msk.bf16.mxu0 %vm4004_vm1, %v4003_v15  ;;  %v4206_v24 = vshrl.u32 %v162_v21, 7  ;;  %v133_v26 = vld [vmem:[#allocation7] sm:$0x3]  ;;  %v3302_v39 = vld [vmem:[#allocation8] ss:$0 sm:$0xff]  ;;  %s4006_s2 = smov 120  }
  0x71   :  { %3459 = vmatpush3.bf16.msra.mxu0 %v3703_v14  ;;  %3468 = vmatprep.mubr.msk.bf16.mxu1 %vm4004_vm1, %v4003_v15  ;;  %s4007_s15 = smov 104   ;;  %s4008_s20 = smov 96   ;;  %vm331_vm2 = vcmask 1043456   ;;  %vm327_vm3 = vcmask 64512   ;;  %v129_v62 = vld [vmem:[#allocation2] sm:$0xff]  ;;  %vm517_vm4 = vcmask 130048  }
  0x72   :  { %3460 = vmatprep.subr.bf16.mxu0 %v4003_v15  ;;  %v4209_v25 = vsub.s32 0, %v4206_v24  ;;  %v4213_v30 = vsub.s32 1, %v4206_v24  ;;  %s4011_s16 = smov 24   ;;  %vm1298_vm5 = vcmask 195584   ;;  %vm1529_vm6 = vcmask 523264  }
  0x73   :  { %vm3068_vm7 = vcmask 1040384   ;;  %vm3131_vm8 = vcmask 254976  }
  0x74   :  { %139 = vadd.xlane.f32.xlu0 %v138_v3  ;;  %v165_v29 = vrot.slane %v133_v26, %v4209_v25  ;;  %v171_v34 = vrot.slane %v133_v26, %v4213_v30 }
  0x75   :  { %3461 = vmatpush3.bf16.msra.mxu0 %v3704_v16 }
  0x76   :  { %3478 = vmatprep.subr.bf16.mxu0 %v4003_v15 }
  0xfd   :  { %v137_v4 = vpop.xlane.xlu0 %136 }
  0xfe   :  { %v142_v5 = vmul.f32 0.03125, %v137_v4 }
 0x100   :  { %v144_v6 = vsub.f32 %v131_v0, %v142_v5  ;;  %v130_v0 = vld [vmem:[#allocation2 + $0x8] sm:$0xff] }
 0x101   :  { %v140_v7 = vpop.xlane.xlu0 %139 }
 0x102   :  { %v143_v8 = vmul.f32 0.03125, %v140_v7  ;;  %v146_v9 = vmul.f32 %v144_v6, %v144_v6 }
 0x104   :  { %v145_v10 = vsub.f32 %v132_v1, %v143_v8  ;;  %v148_v11 = vsel %vm134_vm0, %v146_v9, 0.0 }
 0x105   :  { %149 = vadd.xlane.f32.xlu1 %v148_v11 }
 0x106   :  { %v147_v12 = vmul.f32 %v145_v10, %v145_v10 }
 0x108   :  { %v151_v13 = vsel %vm134_vm0, %v147_v12, 0.0 }
 0x109   :  { %152 = vadd.xlane.f32.xlu1 %v151_v13 }
 0x192   :  { %v150_v17 = vpop.xlane.xlu1 %149 }
 0x193   :  { %v154_v18 = vmul.f32 0.03125, %v150_v17 }
 0x195   :  { %v156_v19 = vadd.f32 1e-12, %v154_v18 }
 0x196   :  { %v153_v20 = vpop.xlane.xlu1 %152 }
 0x197   :  { %3729 = vrsqrt.f32 %v156_v19  ;;  %v155_v22 = vmul.f32 0.03125, %v153_v20 }
 0x199   :  { %v157_v23 = vadd.f32 1e-12, %v155_v22 }
 0x19b   :  { %3731 = vrsqrt.f32 %v157_v23 }
 0x1a1   :  { %v3730_v27 = vpop.eup %3729 }
 0x1a2   :  { %v160_v28 = vmul.f32 %v3730_v27, %v144_v6 }
 0x1a4   :  { %v166_v33 = vmul.f32 %v165_v29, %v160_v28 }
 0x1a5   :  { %v3732_v31 = vpop.eup %3731 }
 0x1a6   :  { %v161_v32 = vmul.f32 %v3732_v31, %v145_v10  ;;  %v4216_v36 = vadd.f32 %v171_v34, %v166_v33 }
 0x1a8   :  { %v167_v35 = vmul.f32 %v165_v29, %v161_v32 }
 0x1aa   :  { %v4218_v37 = vadd.f32 %v171_v34, %v167_v35 }
 0x1ac   :  { %v175_v38 = vpack.c.bf16 %v4218_v37, %v4216_v36 }
 0x1ae   :  { %3463 = vmatmul.mubr.msk.bf16.vlgmr.msra.gmra.mrb[0].mxu0 %vm134_vm0, %v175_v38 }
 0x1af   :  { %3480 = vmatprep.mubr.msk.bf16.mxu0 %vm4004_vm1, %v4003_v15 }
 0x281   :  { %v236_v40 = vpop.f32.mrb[0].mxu0 }
 0x282   :  { %v3464_v41 = vpop.f32.mrb[1].mxu0  ;;  %v237_v43 = vadd.f32 %v3302_v39, %v236_v40 }
 0x283   :  { %v239_v42 = vpop.f32.mrb[2].mxu0 }
 0x284   :  { %v240_v44 = vadd.f32 %v3302_v39, %v239_v42  ;;  %v3465_v45 = vpop.f32.mrb[3].mxu0 }
 0x286   :  { %v4225_v46 = vpack.c.bf16 %v240_v44, %v237_v43 }
 0x288   :  { %247 = vrot.lane.b32.xlu1 %v4225_v46, %s4005_s19  ;;  %245 = vrot.lane.b32.xlu0 %v4225_v46, %s4006_s2 }
 0x28c   :  { %249 = vrot.lane.b32.xlu1 %v4225_v46, %s4007_s15 }
 0x290   :  { %251 = vrot.lane.b32.xlu1 %v4225_v46, %s4008_s20 }
 0x2fa   :  { %v4235_v47 = vpop.permute.xlu1 %247  ;;  %v4237_v48 = vpop.permute.xlu0 %245 }
 0x2fb   :  { %255 = vrot.lane.b32.xlu1 %v4235_v47, %s4008_s20  ;;  %253 = vrot.lane.b32.xlu0 %v4237_v48, %s4008_s20 }
 0x2fe   :  { %v4243_v49 = vpop.permute.xlu1 %249 }
 0x2ff   :  { %257 = vrot.lane.b32.xlu0 %v4243_v49, %s4008_s20 }
 0x302   :  { %v252_v50 = vpop.permute.xlu1 %251 }
 0x31e   :  { %263 = vxpose.xlu1.c.b16.start.end [1/1] (short) (narrow) %v252_v50, 16 }
 0x36d   :  { %v254_v51 = vpop.permute.xlu0 %253  ;;  %v256_v52 = vpop.permute.xlu1 %255 }
 0x36e   :  { %279 = vxpose.xlu0.c.b16.start.end [1/1] (short) (narrow) %v254_v51, 16 }
 0x371   :  { %v258_v53 = vpop.permute.xlu0 %257 }
 0x372   :  { %295 = vxpose.xlu0.c.b16.start.end [1/1] (short) (narrow) %v256_v52, 16 }
 0x376   :  { %311 = vxpose.xlu0.c.b16.start.end [1/1] (short) (narrow) %v258_v53, 16 }
 0x384   :  { %v271_v54 = vpop.trf.xlu1 }
 0x385   :  { %v333_v55 = vsel %vm331_vm2, %v271_v54, 0 }
 0x386   :  { %3467 = vmatpush3.bf16.msra.mxu1 %v333_v55 }
 0x387   :  { %3472 = vmatprep.subr.bf16.mxu1 %v4003_v15 }
 0x389   :  { %3469 = vmatmul.mubr.msk.bf16.vlgmr.msra.gmra.mrb[0].mxu1 %vm327_vm3, %v4225_v46 }
 0x38a   :  { %3474 = vmatprep.mubr.msk.bf16.mxu1 %vm4004_vm1, %v4003_v15 }
 0x3d4   :  { %v287_v56 = vpop.trf.xlu0 }
 0x3d5   :  { %v380_v57 = vsel %vm331_vm2, %v287_v56, 0 }
 0x3d6   :  { %3473 = vmatpush3.bf16.msra.mxu1 %v380_v57 }
 0x3d7   :  { %3484 = vmatprep.subr.bf16.mxu1 %v4003_v15 }
 0x3d8   :  { %v303_v58 = vpop.trf.xlu0 }
 0x3d9   :  { %v427_v59 = vsel %vm331_vm2, %v303_v58, 0  ;;  %3475 = vmatmul.mubr.msk.bf16.vlgmr.msra.gmra.mrb[4].mxu1 %vm327_vm3, %v4237_v48 }
 0x3da   :  { %3479 = vmatpush3.bf16.msra.mxu0 %v427_v59  ;;  %3486 = vmatprep.mubr.msk.bf16.mxu1 %vm4004_vm1, %v4003_v15 }
 0x3db   :  { %3490 = vmatprep.subr.bf16.mxu0 %v4003_v15 }
 0x3dc   :  { %v319_v60 = vpop.trf.xlu0 }
 0x3dd   :  { %v474_v61 = vsel %vm331_vm2, %v319_v60, 0  ;;  %3481 = vmatmul.mubr.msk.bf16.vlgmr.msra.gmra.mrb[4].mxu0 %vm327_vm3, %v4235_v47 }
 0x3de   :  { %3485 = vmatpush3.bf16.msra.mxu1 %v474_v61  ;;  %3492 = vmatprep.mubr.msk.bf16.mxu0 %vm4004_vm1, %v4003_v15 }
 0x3df   :  { %3496 = vmatprep.subr.bf16.mxu1 %v4003_v15 }
 0x3e1   :  { %3487 = vmatmul.mubr.msk.bf16.vlgmr.msra.gmra.mrb[8].mxu1 %vm327_vm3, %v4243_v49 }
 0x3e2   :  { %3498 = vmatprep.mubr.msk.bf16.mxu1 %vm4004_vm1, %v4003_v15 }
 0x45c   :  { %v369_v63 = vpop.f32.mrb[0].mxu1 }
 0x45d   :  { %v370_v1 = vadd.f32 %v369_v63, %v129_v62  ;;  %v3470_v2 = vpop.f32.mrb[1].mxu1 }
 0x45e   :  { %v372_v3 = vpop.f32.mrb[2].mxu1 }
 0x45f   :  { %v373_v4 = vadd.f32 %v372_v3, %v130_v0  ;;  %v3471_v5 = vpop.f32.mrb[3].mxu1  ;;  %v518_v6 = vsel %vm517_vm4, %v370_v1, -inf }
 0x460   :  { %519 = vmax.xlane.f32.xlu1 %v518_v6 }
 0x461   :  { %v521_v7 = vsel %vm517_vm4, %v373_v4, -inf }
 0x462   :  { %522 = vmax.xlane.f32.xlu0 %v521_v7 }
 0x4ac   :  { %v416_v8 = vpop.f32.mrb[4].mxu1 }
 0x4ad   :  { %v417_v9 = vadd.f32 %v416_v8, %v129_v62  ;;  %v3476_v10 = vpop.f32.mrb[5].mxu1 }
 0x4ae   :  { %v419_v11 = vpop.f32.mrb[6].mxu1 }
 0x4af   :  { %v420_v12 = vadd.f32 %v419_v11, %v130_v0  ;;  %v3477_v13 = vpop.f32.mrb[7].mxu1  ;;  %v524_v14 = vsel %vm517_vm4, %v417_v9, -inf }
 0x4b0   :  { %v463_v16 = vpop.f32.mrb[4].mxu0  ;;  %525 = vmax.xlane.f32.xlu1 %v524_v14 }
 0x4b1   :  { %v464_v17 = vadd.f32 %v463_v16, %v129_v62  ;;  %v3482_v18 = vpop.f32.mrb[5].mxu0  ;;  %v527_v19 = vsel %vm517_vm4, %v420_v12, -inf }
 0x4b2   :  { %v466_v20 = vpop.f32.mrb[6].mxu0  ;;  %528 = vmax.xlane.f32.xlu0 %v527_v19 }
 0x4b3   :  { %v467_v21 = vadd.f32 %v466_v20, %v130_v0  ;;  %v3483_v22 = vpop.f32.mrb[7].mxu0  ;;  %v530_v23 = vsel %vm517_vm4, %v464_v17, -inf }
 0x4b4   :  { %v510_v26 = vpop.f32.mrb[8].mxu1  ;;  %531 = vmax.xlane.f32.xlu1 %v530_v23 }
 0x4b5   :  { %v511_v27 = vadd.f32 %v510_v26, %v129_v62  ;;  %v3488_v28 = vpop.f32.mrb[9].mxu1  ;;  %v533_v29 = vsel %vm517_vm4, %v467_v21, -inf }
 0x4b6   :  { %v513_v31 = vpop.f32.mrb[10].mxu1  ;;  %534 = vmax.xlane.f32.xlu0 %v533_v29 }
 0x4b7   :  { %v514_v32 = vadd.f32 %v513_v31, %v130_v0  ;;  %v3489_v33 = vpop.f32.mrb[11].mxu1  ;;  %v536_v34 = vsel %vm517_vm4, %v511_v27, -inf }
 0x4b8   :  { %537 = vmax.xlane.f32.xlu1 %v536_v34 }
 0x4b9   :  { %v539_v35 = vsel %vm517_vm4, %v514_v32, -inf }
 0x4ba   :  { %540 = vmax.xlane.f32.xlu0 %v539_v35 }
 0x4c9   :  { %610 = vrot.lane.b32.xlu1 %v4225_v46, %s4001_s7 }
 0x4cd   :  { %614 = vrot.lane.b32.xlu1 %v4235_v47, %s4001_s7 }
 0x4d0   :  { %612 = vrot.lane.b32.xlu0 %v4237_v48, %s4001_s7 }
 0x4d4   :  { %616 = vrot.lane.b32.xlu0 %v4243_v49, %s4001_s7 }
 0x4ed   :  { %v520_v38 = vpop.xlane.xlu1 %519 }
 0x4ee   :  { %v542_v39 = vsub.f32 %v370_v1, %v520_v38 }
 0x4ef   :  { %v523_v40 = vpop.xlane.xlu0 %522 }
 0x4f0   :  { %v550_v41 = vmul.f32 1.442695, %v542_v39  ;;  %v543_v42 = vsub.f32 %v373_v4, %v523_v40 }
 0x4f2   :  { %3733 = vpow2.f32 %v550_v41  ;;  %v552_v43 = vmul.f32 1.442695, %v543_v42 }
 0x4f4   :  { %3735 = vpow2.f32 %v552_v43 }
 0x4fc   :  { %v3734_v44 = vpop.eup %3733 }
 0x4fd   :  { %v566_v45 = vsel %vm517_vm4, %v3734_v44, 0.0 }
 0x4fe   :  { %v3736_v46 = vpop.eup %3735  ;;  %567 = vadd.xlane.f32.xlu1 %v566_v45 }
 0x4ff   :  { %v569_v47 = vsel %vm517_vm4, %v3736_v46, 0.0 }
 0x500   :  { %570 = vadd.xlane.f32.xlu0 %v569_v47 }
 0x53d   :  { %v526_v48 = vpop.xlane.xlu1 %525 }
 0x53e   :  { %v544_v50 = vsub.f32 %v417_v9, %v526_v48 }
 0x53f   :  { %v529_v51 = vpop.xlane.xlu0 %528 }
 0x540   :  { %v554_v49 = vmul.f32 1.442695, %v544_v50  ;;  %v545_v52 = vsub.f32 %v420_v12, %v529_v51 }
 0x541   :  { %v532_v53 = vpop.xlane.xlu1 %531 }
 0x542   :  { %3737 = vpow2.f32 %v554_v49  ;;  %v556_v54 = vmul.f32 1.442695, %v545_v52  ;;  %v546_v55 = vsub.f32 %v464_v17, %v532_v53 }
 0x543   :  { %v535_v56 = vpop.xlane.xlu0 %534 }
 0x544   :  { %3739 = vpow2.f32 %v556_v54  ;;  %v558_v57 = vmul.f32 1.442695, %v546_v55  ;;  %v547_v58 = vsub.f32 %v467_v21, %v535_v56 }
 0x545   :  { %v538_v59 = vpop.xlane.xlu1 %537 }
 0x546   :  { %3741 = vpow2.f32 %v558_v57  ;;  %v560_v60 = vmul.f32 1.442695, %v547_v58  ;;  %v548_v61 = vsub.f32 %v511_v27, %v538_v59 }
 0x547   :  { %v541_v62 = vpop.xlane.xlu0 %540 }
 0x548   :  { %3743 = vpow2.f32 %v560_v60  ;;  %v562_v63 = vmul.f32 1.442695, %v548_v61  ;;  %v549_v0 = vsub.f32 %v514_v32, %v541_v62 }
 0x549   :  { %v611_v14 = vpop.permute.xlu1 %610 }
 0x54a   :  { %3745 = vpow2.f32 %v562_v63  ;;  %v564_v1 = vmul.f32 1.442695, %v549_v0 }
 0x54b   :  { %v613_v16 = vpop.permute.xlu0 %612 }
 0x54c   :  { %v3738_v2 = vpop.eup %3737  ;;  %3747 = vpow2.f32 %v564_v1 }
 0x54d   :  { %v572_v3 = vsel %vm517_vm4, %v3738_v2, 0.0  ;;  %v615_v17 = vpop.permute.xlu1 %614 }
 0x54e   :  { %v3740_v4 = vpop.eup %3739  ;;  %573 = vadd.xlane.f32.xlu1 %v572_v3 }
 0x54f   :  { %v575_v5 = vsel %vm517_vm4, %v3740_v4, 0.0  ;;  %v617_v18 = vpop.permute.xlu0 %616 }
 0x550   :  { %v3742_v6 = vpop.eup %3741  ;;  %576 = vadd.xlane.f32.xlu0 %v575_v5 }
 0x551   :  { %v578_v7 = vsel %vm517_vm4, %v3742_v6, 0.0 }
 0x552   :  { %v3744_v8 = vpop.eup %3743  ;;  %579 = vadd.xlane.f32.xlu1 %v578_v7 }
 0x553   :  { %v581_v9 = vsel %vm517_vm4, %v3744_v8, 0.0 }
 0x554   :  { %v3746_v10 = vpop.eup %3745  ;;  %582 = vadd.xlane.f32.xlu0 %v581_v9 }
 0x555   :  { %v584_v11 = vsel %vm517_vm4, %v3746_v10, 0.0 }
 0x556   :  { %v3748_v12 = vpop.eup %3747  ;;  %585 = vadd.xlane.f32.xlu1 %v584_v11 }
 0x557   :  { %v587_v13 = vsel %vm517_vm4, %v3748_v12, 0.0 }
 0x558   :  { %588 = vadd.xlane.f32.xlu0 %v587_v13  ;;  %v4009_v13 = vmov 1983009808  }
 0x583   :  { %622 = vxpose.xlu1.c.b16.start.end [1/1] (short) (narrow) %v611_v14, 16  ;;  %v1001_v14 = vunpack.c.l.s4 %v4009_v13 }
 0x585   :  { %638 = vxpose.xlu0.c.b16.start.end [1/1] (short) (narrow) %v613_v16, 16 }
 0x587   :  { %654 = vxpose.xlu1.c.b16.start.end [1/1] (short) (narrow) %v615_v17, 16  ;;  %v4010_v17 = vmov 1934713408  }
 0x589   :  { %670 = vxpose.xlu0.c.b16.start.end [1/1] (short) (narrow) %v617_v18, 16  ;;  %v1033_v18 = vunpack.c.l.s4 %v4010_v17 }
 0x58b   :  { %v568_v19 = vpop.xlane.xlu1 %567 }
 0x58c   :  { %3749 = vrcp.f32 %v568_v19 }
 0x58d   :  { %v571_v20 = vpop.xlane.xlu0 %570 }
 0x58e   :  { %3751 = vrcp.f32 %v571_v20  ;;  %v1002_v20 = vunpack.c.0.s8 %v1001_v14  ;;  %v3705_v14 = vld [vmem:[%s4706_s5] sm:$0xff]  }
 0x596   :  { %v3750_v21 = vpop.eup %3749 }
 0x597   :  { %v598_v23 = vmul.f32 %v3750_v21, %v3734_v44 }
 0x598   :  { %v3752_v22 = vpop.eup %3751 }
 0x599   :  { %v599_v26 = vmul.f32 %v3752_v22, %v3736_v46  ;;  %v1034_v22 = vunpack.c.0.s8 %v1033_v18 }
 0x59b   :  { %v606_v27 = vpack.c.bf16 %v599_v26, %v598_v23  ;;  %v4316_v23 = vsub.s32 %v1002_v20, %v4206_v24 }
 0x59d   :  { %v690_v28 = vsel %vm517_vm4, %v606_v27, 0 }
 0x59e   :  { %3491 = vmatpush3.bf16.xpose.msra.mxu0 %v690_v28 }
 0x59f   :  { %3502 = vmatprep.subr.bf16.mxu0 %v4003_v15 }
 0x5db   :  { %v574_v29 = vpop.xlane.xlu1 %573 }
 0x5dc   :  { %3753 = vrcp.f32 %v574_v29 }
 0x5dd   :  { %v577_v31 = vpop.xlane.xlu0 %576 }
 0x5de   :  { %3755 = vrcp.f32 %v577_v31 }
 0x5df   :  { %v580_v32 = vpop.xlane.xlu1 %579 }
 0x5e0   :  { %3757 = vrcp.f32 %v580_v32 }
 0x5e1   :  { %v583_v33 = vpop.xlane.xlu0 %582 }
 0x5e2   :  { %3759 = vrcp.f32 %v583_v33  ;;  %v4319_v33 = vsub.s32 %v1034_v22, %v4206_v24 }
 0x5e3   :  { %v586_v34 = vpop.xlane.xlu1 %585 }
 0x5e4   :  { %3761 = vrcp.f32 %v586_v34 }
 0x5e5   :  { %v589_v35 = vpop.xlane.xlu0 %588 }
 0x5e6   :  { %v3754_v38 = vpop.eup %3753  ;;  %3763 = vrcp.f32 %v589_v35 }
 0x5e7   :  { %v600_v40 = vmul.f32 %v3754_v38, %v3738_v2 }
 0x5e8   :  { %v3756_v39 = vpop.eup %3755 }
 0x5e9   :  { %v601_v41 = vmul.f32 %v3756_v39, %v3740_v4  ;;  %v630_v42 = vpop.trf.xlu1 }
 0x5ea   :  { %v3758_v43 = vpop.eup %3757  ;;  %3493 = vmatmul.mubr.msk.bf16.vlgmr.msra.gmra.mrb[8].mxu0 %vm517_vm4, %v630_v42 }
 0x5eb   :  { %v607_v44 = vpack.c.bf16 %v601_v41, %v600_v40  ;;  %3504 = vmatprep.mubr.msk.bf16.mxu0 %vm4004_vm1, %v4003_v15  ;;  %v602_v47 = vmul.f32 %v3758_v43, %v3742_v6  ;;  %v646_v55 = vpop.trf.xlu0 }
 0x5ec   :  { %v3760_v45 = vpop.eup %3759 }
 0x5ed   :  { %v736_v46 = vsel %vm517_vm4, %v607_v44, 0  ;;  %v603_v48 = vmul.f32 %v3760_v45, %v3744_v8  ;;  %v662_v58 = vpop.trf.xlu1 }
 0x5ee   :  { %v3762_v50 = vpop.eup %3761  ;;  %3497 = vmatpush3.bf16.xpose.msra.mxu1 %v736_v46 }
 0x5ef   :  { %v608_v51 = vpack.c.bf16 %v603_v48, %v602_v47  ;;  %3508 = vmatprep.subr.bf16.mxu1 %v4003_v15  ;;  %v604_v53 = vmul.f32 %v3762_v50, %v3746_v10  ;;  %v678_v59 = vpop.trf.xlu0 }
 0x5f0   :  { %v3764_v49 = vpop.eup %3763 }
 0x5f1   :  { %v782_v52 = vsel %vm517_vm4, %v608_v51, 0  ;;  %v605_v54 = vmul.f32 %v3764_v49, %v3748_v12 }
 0x5f2   :  { %3503 = vmatpush3.bf16.xpose.msra.mxu0 %v782_v52 }
 0x5f3   :  { %v609_v56 = vpack.c.bf16 %v605_v54, %v604_v53  ;;  %3514 = vmatprep.subr.bf16.mxu0 %v4003_v15 }
 0x5f5   :  { %3499 = vmatmul.mubr.msk.bf16.vlgmr.msra.gmra.mrb[12].mxu1 %vm517_vm4, %v646_v55  ;;  %v828_v57 = vsel %vm517_vm4, %v609_v56, 0 }
 0x5f6   :  { %3509 = vmatpush3.bf16.xpose.msra.mxu1 %v828_v57  ;;  %3510 = vmatprep.mubr.msk.bf16.mxu1 %vm4004_vm1, %v4003_v15 }
 0x5f7   :  { %3522 = vmatprep.subr.bf16.mxu1 %v4003_v15 }
 0x5f9   :  { %3505 = vmatmul.mubr.msk.bf16.vlgmr.msra.gmra.mrb[12].mxu0 %vm517_vm4, %v662_v58 }
 0x5fa   :  { %3518 = vmatprep.mubr.msk.bf16.mxu0 %vm4004_vm1, %v4003_v15  ;;  %3515 = vmatpush3.bf16.msra.mxu0 %v3705_v14 }
 0x5fb   :  { %3516 = vmatprep.subr.bf16.mxu0 %v4003_v15 }
 0x5fd   :  { %3511 = vmatmul.mubr.msk.bf16.vlgmr.msra.gmra.mrb[16].mxu1 %vm517_vm4, %v678_v59 }
 0x5fe   :  { %3526 = vmatprep.mubr.msk.bf16.mxu1 %vm4004_vm1, %v4003_v15 }
 0x6bd   :  { %v726_v60 = vpop.f32.mrb[8].mxu0 }
 0x6be   :  { %v3494_v61 = vpop.f32.mrb[9].mxu0  ;;  %870 = vxpose.xlu1.b32.start.end [1/1] (short) (narrow) %v726_v60, 16 }
 0x6bf   :  { %v729_v62 = vpop.f32.mrb[10].mxu0 }
 0x6c0   :  { %v3495_v63 = vpop.f32.mrb[11].mxu0 }
 0x6c8   :  { %v772_v0 = vpop.f32.mrb[12].mxu1 }
 0x6c9   :  { %902 = vxpose.xlu0.b32.start.end [1/1] (short) (narrow) %v772_v0, 16  ;;  %v3500_v1 = vpop.f32.mrb[13].mxu1 }
 0x6ca   :  { %v775_v2 = vpop.f32.mrb[14].mxu1 }
 0x6cb   :  { %v3501_v3 = vpop.f32.mrb[15].mxu1 }
 0x6cc   :  { %v818_v4 = vpop.f32.mrb[12].mxu0 }
 0x6cd   :  { %v3506_v5 = vpop.f32.mrb[13].mxu0 }
 0x6ce   :  { %v821_v6 = vpop.f32.mrb[14].mxu0  ;;  %934 = vxpose.xlu0.b32.start.end [1/1] (short) (narrow) %v818_v4, 16 }
 0x6cf   :  { %v3507_v7 = vpop.f32.mrb[15].mxu0 }
 0x6d0   :  { %v864_v8 = vpop.f32.mrb[16].mxu1 }
 0x6d1   :  { %v3512_v9 = vpop.f32.mrb[17].mxu1  ;;  %966 = vxpose.xlu1.b32.start.end [1/1] (short) (narrow) %v864_v8, 16 }
 0x6d2   :  { %v867_v10 = vpop.f32.mrb[18].mxu1 }
 0x6d3   :  { %v3513_v11 = vpop.f32.mrb[19].mxu1 }
 0x73e   :  { %v886_v12 = vpop.trf.xlu1 }
 0x742   :  { %v887_v19 = vpop.trf.xlu1 }
 0x749   :  { %v918_v16 = vpop.trf.xlu0 }
 0x74d   :  { %v919_v21 = vpop.trf.xlu0 }
 0x751   :  { %v950_v26 = vpop.trf.xlu0  ;;  %v982_v27 = vpop.trf.xlu1 }
 0x752   :  { %v998_v28 = vcombine.low %v886_v12, %v950_v26  ;;  %v999_v29 = vcombine.high %v886_v12, %v950_v26  ;;  %v1014_v31 = vcombine.low %v918_v16, %v982_v27  ;;  %v1015_v32 = vcombine.high %v918_v16, %v982_v27 }
 0x754   :  { %v1006_v34 = vrot.slane %v998_v28, %v4316_v23  ;;  %v1013_v35 = vrot.slane %v999_v29, %v4316_v23  ;;  %v1022_v38 = vrot.slane %v1014_v31, %v4316_v23  ;;  %v1029_v39 = vrot.slane %v1015_v32, %v4316_v23 }
 0x755   :  { %v951_v40 = vpop.trf.xlu0  ;;  %v983_v41 = vpop.trf.xlu1 }
 0x756   :  { %v1030_v42 = vcombine.low %v1006_v34, %v1022_v38  ;;  %v1031_v43 = vcombine.high %v1006_v34, %v1022_v38  ;;  %v1046_v44 = vcombine.low %v1013_v35, %v1029_v39  ;;  %v1047_v45 = vcombine.high %v1013_v35, %v1029_v39  ;;  %v3706_v34 = vld [vmem:[%s4706_s5 + $0x8] sm:$0xff]  }
 0x757   :  { %v1066_v46 = vcombine.low %v887_v19, %v951_v40  ;;  %v1067_v47 = vcombine.high %v887_v19, %v951_v40  ;;  %v1082_v48 = vcombine.low %v919_v21, %v983_v41  ;;  %v1083_v50 = vcombine.high %v919_v21, %v983_v41  ;;  %3517 = vmatpush3.bf16.msra.mxu0 %v3706_v34  ;;  %v3708_v34 = vld [vmem:[%s4707_s6 + $0x8] sm:$0xff]  }
 0x758   :  { %v1038_v51 = vrot.slane %v1030_v42, %v4319_v33  ;;  %v1045_v49 = vrot.slane %v1031_v43, %v4319_v33  ;;  %v1054_v52 = vrot.slane %v1046_v44, %v4319_v33  ;;  %v1061_v53 = vrot.slane %v1047_v45, %v4319_v33  ;;  %3530 = vmatprep.subr.bf16.mxu0 %v4003_v15 }
 0x759   :  { %v1074_v54 = vrot.slane %v1066_v46, %v4316_v23  ;;  %v1081_v55 = vrot.slane %v1067_v47, %v4316_v23  ;;  %v1090_v56 = vrot.slane %v1082_v48, %v4316_v23  ;;  %v1097_v57 = vrot.slane %v1083_v50, %v4316_v23 }
 0x75a   :  { %v1134_v58 = vcombine.low %v1038_v51, %v1045_v49  ;;  %v3314_v59 = vcombine.high %v1038_v51, %v1045_v49  ;;  %v1150_v60 = vcombine.low %v1054_v52, %v1061_v53  ;;  %v3315_v61 = vcombine.high %v1054_v52, %v1061_v53 }
 0x75b   :  { %v1098_v62 = vcombine.low %v1074_v54, %v1090_v56  ;;  %v1099_v63 = vcombine.high %v1074_v54, %v1090_v56  ;;  %v1114_v0 = vcombine.low %v1081_v55, %v1097_v57  ;;  %v1115_v1 = vcombine.high %v1081_v55, %v1097_v57 }
 0x75c   :  { %v1141_v2 = vrot.slane %v1134_v58, %v4316_v23  ;;  %v1149_v3 = vrot.slane %v3314_v59, %v4316_v23  ;;  %v1157_v4 = vrot.slane %v1150_v60, %v4316_v23  ;;  %v1165_v5 = vrot.slane %v3315_v61, %v4316_v23 }
 0x75d   :  { %v1106_v6 = vrot.slane %v1098_v62, %v4319_v33  ;;  %v1113_v7 = vrot.slane %v1099_v63, %v4319_v33  ;;  %v1122_v8 = vrot.slane %v1114_v0, %v4319_v33  ;;  %v1129_v9 = vrot.slane %v1115_v1, %v4319_v33 }
 0x75e   :  { %v1167_v10 = vcombine.high %v1141_v2, %v1149_v3  ;;  %v1183_v11 = vcombine.high %v1157_v4, %v1165_v5  ;;  %v1166_v12 = vcombine.low %v1141_v2, %v1149_v3  ;;  %v1182_v13 = vcombine.low %v1157_v4, %v1165_v5 }
 0x75f   :  { %v1202_v16 = vcombine.low %v1106_v6, %v1113_v7  ;;  %v3316_v17 = vcombine.high %v1106_v6, %v1113_v7  ;;  %v1218_v18 = vcombine.low %v1122_v8, %v1129_v9  ;;  %v3317_v19 = vcombine.high %v1122_v8, %v1129_v9  ;;  %v4376_v7 = vld [vmem:[%s4710_s9] sm:$0x3f] }
 0x760   :  { %v1174_v20 = vrot.slane %v1166_v12, %v4319_v33  ;;  %v1190_v21 = vrot.slane %v1182_v13, %v4319_v33  ;;  %v1181_v29 = vrot.slane %v1167_v10, %v4319_v33  ;;  %v1197_v31 = vrot.slane %v1183_v11, %v4319_v33 }
 0x761   :  { %v1209_v22 = vrot.slane %v1202_v16, %v4316_v23  ;;  %v1217_v26 = vrot.slane %v3316_v17, %v4316_v23  ;;  %v1225_v27 = vrot.slane %v1218_v18, %v4316_v23  ;;  %v1233_v28 = vrot.slane %v3317_v19, %v4316_v23 }
 0x762   :  { %v1198_v32 = vcombine.low %v1174_v20, %v1190_v21  ;;  %v1200_v45 = vcombine.low %v1181_v29, %v1197_v31  ;;  %v1199_v47 = vcombine.high %v1174_v20, %v1190_v21  ;;  %v1201_v53 = vcombine.high %v1181_v29, %v1197_v31 }
 0x763   :  { %v1235_v35 = vcombine.high %v1209_v22, %v1217_v26  ;;  %v1251_v38 = vcombine.high %v1225_v27, %v1233_v28  ;;  %v1234_v39 = vcombine.low %v1209_v22, %v1217_v26  ;;  %v1250_v40 = vcombine.low %v1225_v27, %v1233_v28 }
 0x764   :  { %v1309_v8 = vrot.slane %v4376_v7, %v4209_v25 }
 0x765   :  { %v1249_v41 = vrot.slane %v1235_v35, %v4319_v33  ;;  %v1265_v42 = vrot.slane %v1251_v38, %v4319_v33  ;;  %v1242_v43 = vrot.slane %v1234_v39, %v4319_v33  ;;  %v1258_v44 = vrot.slane %v1250_v40, %v4319_v33 }
 0x767   :  { %v1268_v46 = vcombine.low %v1249_v41, %v1265_v42  ;;  %v1267_v48 = vcombine.high %v1242_v43, %v1258_v44  ;;  %v1266_v50 = vcombine.low %v1242_v43, %v1258_v44  ;;  %v1269_v52 = vcombine.high %v1249_v41, %v1265_v42 }
 0x768   :  { %v1397_v43 = vrot.slane %v4376_v7, %v4213_v30  ;;  %v4397_v44 = vsub.s32 2, %v4206_v24 }
 0x769   :  { %v3678_v51 = vpack.i.bf16 %v1268_v46, %v1200_v45  ;;  %v3673_v49 = vpack.i.bf16 %v1267_v48, %v1199_v47  ;;  %v3683_v54 = vpack.i.bf16 %v1269_v52, %v1201_v53 }
 0x76b   :  { %3679 = vrot.lane.b32.xlu1 %v3678_v51, %s3995_s1  ;;  %3674 = vrot.lane.b32.xlu0 %v3673_v49, %s3994_s26  ;;  %v1403_v51 = vrot.slane %v4376_v7, %v4397_v44 }
 0x76f   :  { %3684 = vrot.lane.b32.xlu1 %v3683_v54, %s4011_s16 }
 0x7dd   :  { %v3680_v55 = vpop.permute.xlu1 %3679  ;;  %v3675_v56 = vpop.permute.xlu0 %3674 }
 0x7de   :  { %v3677_v57 = vunpack.i.h.bf16 %v3675_v56  ;;  %v3676_v58 = vunpack.i.l.bf16 %v3675_v56  ;;  %v3682_v59 = vunpack.i.h.bf16 %v3680_v55  ;;  %v3681_v60 = vunpack.i.l.bf16 %v3680_v55  ;;  %v3709_v55 = vld [vmem:[%s4709_s8] sm:$0xff]   ;;  %v3710_v56 = vld [vmem:[%s4709_s8 + $0x8] sm:$0xff]  }
 0x7e0   :  { %v1294_v61 = vsel %vm327_vm3, %v1198_v32, %v3676_v58  ;;  %v1295_v62 = vsel %vm327_vm3, %v1266_v50, %v3677_v57  ;;  %v3711_v57 = vld [vmem:[%s4709_s8 + $0x10] sm:$0xff]   ;;  %v3712_v58 = vld [vmem:[%s4709_s8 + $0x18] sm:$0xff]  }
 0x7e1   :  { %v3685_v63 = vpop.permute.xlu1 %3684  ;;  %v1296_v2 = vsel %vm517_vm4, %v1294_v61, %v3681_v60  ;;  %v1297_v3 = vsel %vm517_vm4, %v1295_v62, %v3682_v59  ;;  %v3321_v59 = vld [vmem:[#allocation10] ss:$0 sm:$0xff] }
 0x7e2   :  { %v3687_v0 = vunpack.i.h.bf16 %v3685_v63  ;;  %v3686_v1 = vunpack.i.l.bf16 %v3685_v63 }
 0x7e4   :  { %v1299_v4 = vsel %vm1298_vm5, %v1296_v2, %v3686_v1  ;;  %v1300_v5 = vsel %vm1298_vm5, %v1297_v3, %v3687_v0 }
 0x7e5   :  { %v1301_v6 = vpack.c.bf16 %v1300_v5, %v1299_v4 }
 0x7e7   :  { %3519 = vmatmul.mubr.msk.bf16.vlgmr.msra.gmra.mrb[16].mxu0 %vm134_vm0, %v1301_v6 }
 0x7e8   :  { %3538 = vmatprep.mubr.msk.bf16.mxu0 %vm4004_vm1, %v4003_v15  ;;  %3531 = vmatpush3.bf16.msra.mxu0 %v3709_v55 }
 0x7e9   :  { %3532 = vmatprep.subr.bf16.mxu0 %v4003_v15 }
 0x7ec   :  { %3533 = vmatpush3.bf16.msra.mxu0 %v3710_v56 }
 0x7ed   :  { %3534 = vmatprep.subr.bf16.mxu0 %v4003_v15 }
 0x7f0   :  { %3535 = vmatpush3.bf16.msra.mxu0 %v3711_v57 }
 0x7f1   :  { %3536 = vmatprep.subr.bf16.mxu0 %v4003_v15 }
 0x7f4   :  { %3537 = vmatpush3.bf16.msra.mxu0 %v3712_v58 }
 0x7f5   :  { %3556 = vmatprep.subr.bf16.mxu0 %v4003_v15 }
 0x8ba   :  { %v1359_v9 = vpop.f32.mrb[16].mxu0 }
 0x8bb   :  { %v1360_v10 = vadd.f32 %v1359_v9, %v1309_v8  ;;  %v3520_v11 = vpop.f32.mrb[17].mxu0 }
 0x8bc   :  { %v1362_v12 = vpop.f32.mrb[18].mxu0 }
 0x8bd   :  { %v1363_v13 = vadd.f32 %v1362_v12, %v1309_v8  ;;  %v3521_v14 = vpop.f32.mrb[19].mxu0  ;;  %v1366_v16 = vadd.f32 %v1360_v10, %v4216_v36 }
 0x8bf   :  { %v1368_v17 = vsel %vm134_vm0, %v1366_v16, 0.0  ;;  %v1367_v18 = vadd.f32 %v1363_v13, %v4218_v37  ;;  %v3707_v37 = vld [vmem:[%s4707_s6] sm:$0xff]  }
 0x8c0   :  { %1369 = vadd.xlane.f32.xlu1 %v1368_v17  ;;  %3523 = vmatpush3.bf16.msra.mxu1 %v3707_v37 }
 0x8c1   :  { %v1371_v19 = vsel %vm134_vm0, %v1367_v18, 0.0  ;;  %3524 = vmatprep.subr.bf16.mxu1 %v4003_v15 }
 0x8c2   :  { %1372 = vadd.xlane.f32.xlu0 %v1371_v19 }
 0x8c4   :  { %3525 = vmatpush3.bf16.msra.mxu1 %v3708_v34 }
 0x8c5   :  { %3542 = vmatprep.subr.bf16.mxu1 %v4003_v15 }
 0x94d   :  { %v1370_v20 = vpop.xlane.xlu1 %1369 }
 0x94e   :  { %v1374_v21 = vmul.f32 0.03125, %v1370_v20 }
 0x94f   :  { %v1373_v22 = vpop.xlane.xlu0 %1372 }
 0x950   :  { %v1376_v26 = vsub.f32 %v1366_v16, %v1374_v21  ;;  %v1375_v27 = vmul.f32 0.03125, %v1373_v22 }
 0x952   :  { %v1377_v28 = vsub.f32 %v1367_v18, %v1375_v27  ;;  %v1378_v29 = vmul.f32 %v1376_v26, %v1376_v26 }
 0x954   :  { %v1380_v31 = vsel %vm134_vm0, %v1378_v29, 0.0  ;;  %v1379_v32 = vmul.f32 %v1377_v28, %v1377_v28 }
 0x955   :  { %1381 = vadd.xlane.f32.xlu0 %v1380_v31 }
 0x956   :  { %v1383_v36 = vsel %vm134_vm0, %v1379_v32, 0.0 }
 0x957   :  { %1384 = vadd.xlane.f32.xlu1 %v1383_v36 }
 0x9e2   :  { %v1382_v35 = vpop.xlane.xlu0 %1381 }
 0x9e3   :  { %v1386_v38 = vmul.f32 0.03125, %v1382_v35 }
 0x9e4   :  { %v1385_v39 = vpop.xlane.xlu1 %1384 }
 0x9e5   :  { %v1388_v40 = vadd.f32 1e-12, %v1386_v38  ;;  %v1387_v41 = vmul.f32 0.03125, %v1385_v39 }
 0x9e7   :  { %3765 = vrsqrt.f32 %v1388_v40  ;;  %v1389_v42 = vadd.f32 1e-12, %v1387_v41 }
 0x9e9   :  { %3767 = vrsqrt.f32 %v1389_v42 }
 0x9f1   :  { %v3766_v45 = vpop.eup %3765 }
 0x9f2   :  { %v1392_v46 = vmul.f32 %v3766_v45, %v1376_v26  ;;  %v1503_v26 = vsub.s32 5, %v4206_v24 }
 0x9f3   :  { %v3768_v47 = vpop.eup %3767 }
 0x9f4   :  { %v1398_v48 = vmul.f32 %v1397_v43, %v1392_v46  ;;  %v1393_v50 = vmul.f32 %v3768_v47, %v1377_v28  ;;  %v1504_v27 = vrot.slane %v4376_v7, %v1503_v26 }
 0x9f6   :  { %v1399_v49 = vmul.f32 %v1397_v43, %v1393_v50  ;;  %v1404_v52 = vadd.f32 %v1403_v51, %v1398_v48 }
 0x9f8   :  { %v1405_v53 = vadd.f32 %v1403_v51, %v1399_v49  ;;  %v3713_v49 = vld [vmem:[%s4704_s3 + $0x10] sm:$0xff]  }
 0x9fa   :  { %v1406_v54 = vpack.c.bf16 %v1405_v53, %v1404_v52 }
 0x9fc   :  { %3527 = vmatmul.mubr.msk.bf16.vlgmr.msra.gmra.mrb[20].mxu1 %vm134_vm0, %v1406_v54 }
 0x9fd   :  { %3546 = vmatprep.mubr.msk.bf16.mxu1 %vm4004_vm1, %v4003_v15  ;;  %3543 = vmatpush3.bf16.msra.mxu1 %v3713_v49 }
 0x9fe   :  { %3544 = vmatprep.subr.bf16.mxu1 %v4003_v15 }
 0xacf   :  { %v1467_v60 = vpop.f32.mrb[20].mxu1 }
 0xad0   :  { %v1468_v61 = vadd.f32 %v3321_v59, %v1467_v60  ;;  %v3528_v62 = vpop.f32.mrb[21].mxu1 }
 0xad1   :  { %v1470_v63 = vpop.f32.mrb[22].mxu1 }
 0xad2   :  { %v1474_v0 = vmul.f32 %v1468_v61, %v1468_v61  ;;  %v1471_v1 = vadd.f32 %v3321_v59, %v1470_v63  ;;  %v3529_v2 = vpop.f32.mrb[23].mxu1  ;;  %v4440_v59 = vsub.s32 3, %v4206_v24 }
 0xad4   :  { %v1476_v3 = vmul.f32 %v1474_v0, %v1468_v61  ;;  %v1475_v4 = vmul.f32 %v1471_v1, %v1471_v1  ;;  %v1605_v60 = vrot.slane %v4376_v7, %v4440_v59 }
 0xad6   :  { %v1478_v5 = vmul.f32 0.044715, %v1476_v3  ;;  %v1477_v6 = vmul.f32 %v1475_v4, %v1471_v1 }
 0xad8   :  { %v1480_v8 = vadd.f32 %v1478_v5, %v1468_v61  ;;  %v1479_v9 = vmul.f32 0.044715, %v1477_v6 }
 0xada   :  { %v1482_v10 = vmul.f32 0.7978846, %v1480_v8  ;;  %v1481_v11 = vadd.f32 %v1479_v9, %v1471_v1  ;;  %v3335_v9 = vld [vmem:[#allocation8 + $0x1] ss:$0 sm:$0xff] }
 0xadc   :  { %3769 = vtanh.f32 %v1482_v10  ;;  %v1483_v12 = vmul.f32 0.7978846, %v1481_v11 }
 0xade   :  { %3771 = vtanh.f32 %v1483_v12 }
 0xae6   :  { %v3770_v13 = vpop.eup %3769 }
 0xae7   :  { %v1486_v14 = vadd.f32 1.0, %v3770_v13 }
 0xae8   :  { %v3772_v16 = vpop.eup %3771 }
 0xae9   :  { %v1488_v17 = vmul.f32 0.5, %v1486_v14  ;;  %v1487_v18 = vadd.f32 1.0, %v3772_v16 }
 0xaeb   :  { %v1489_v19 = vmul.f32 0.5, %v1487_v18  ;;  %v1490_v20 = vmul.f32 %v1488_v17, %v1468_v61  ;;  %v1610_v61 = vsub.s32 4, %v4206_v24 }
 0xaed   :  { %v1491_v21 = vmul.f32 %v1489_v19, %v1471_v1  ;;  %v1611_v3 = vrot.slane %v4376_v7, %v1610_v61 }
 0xaef   :  { %v1492_v22 = vpack.c.bf16 %v1491_v21, %v1490_v20 }
 0xaf1   :  { %3539 = vmatmul.mubr.msk.bf16.vlgmr.msra.gmra.mrb[20].mxu0 %vm1529_vm6, %v1492_v22 }
 0xaf2   :  { %3558 = vmatprep.mubr.msk.bf16.mxu0 %vm4004_vm1, %v4003_v15 }
 0xbc4   :  { %v1567_v28 = vpop.f32.mrb[20].mxu0 }
 0xbc5   :  { %v1568_v29 = vadd.f32 %v1567_v28, %v1504_v27  ;;  %v3540_v31 = vpop.f32.mrb[21].mxu0 }
 0xbc6   :  { %v1570_v32 = vpop.f32.mrb[22].mxu0 }
 0xbc7   :  { %v1571_v36 = vadd.f32 %v1570_v32, %v1504_v27  ;;  %v3541_v37 = vpop.f32.mrb[23].mxu0  ;;  %v1574_v34 = vadd.f32 %v1568_v29, %v1404_v52  ;;  %v3714_v52 = vld [vmem:[%s4704_s3 + $0x18] sm:$0xff]  }
 0xbc8   :  { %3545 = vmatpush3.bf16.msra.mxu1 %v3714_v52 }
 0xbc9   :  { %v1576_v35 = vsel %vm134_vm0, %v1574_v34, 0.0  ;;  %v1575_v38 = vadd.f32 %v1571_v36, %v1405_v53  ;;  %3550 = vmatprep.subr.bf16.mxu1 %v4003_v15 }
 0xbca   :  { %1577 = vadd.xlane.f32.xlu0 %v1576_v35 }
 0xbcb   :  { %v1579_v39 = vsel %vm134_vm0, %v1575_v38, 0.0 }
 0xbcc   :  { %1580 = vadd.xlane.f32.xlu1 %v1579_v39  ;;  %v3825_v39 = vld [vmem:[#allocation2] sm:$0xff] }
 0xc57   :  { %v1578_v40 = vpop.xlane.xlu0 %1577 }
 0xc58   :  { %v1582_v41 = vmul.f32 0.03125, %v1578_v40 }
 0xc59   :  { %v1581_v42 = vpop.xlane.xlu1 %1580 }
 0xc5a   :  { %v1584_v43 = vsub.f32 %v1574_v34, %v1582_v41  ;;  %v1583_v45 = vmul.f32 0.03125, %v1581_v42 }
 0xc5c   :  { %v1585_v46 = vsub.f32 %v1575_v38, %v1583_v45  ;;  %v1586_v47 = vmul.f32 %v1584_v43, %v1584_v43 }
 0xc5e   :  { %v1588_v48 = vsel %vm134_vm0, %v1586_v47, 0.0  ;;  %v1587_v50 = vmul.f32 %v1585_v46, %v1585_v46 }
 0xc5f   :  { %1589 = vadd.xlane.f32.xlu0 %v1588_v48 }
 0xc60   :  { %v1591_v51 = vsel %vm134_vm0, %v1587_v50, 0.0 }
 0xc61   :  { %1592 = vadd.xlane.f32.xlu1 %v1591_v51 }
 0xcec   :  { %v1590_v53 = vpop.xlane.xlu0 %1589 }
 0xced   :  { %v1594_v54 = vmul.f32 0.03125, %v1590_v53 }
 0xcee   :  { %v1593_v55 = vpop.xlane.xlu1 %1592 }
 0xcef   :  { %v1596_v56 = vadd.f32 1e-12, %v1594_v54  ;;  %v1595_v57 = vmul.f32 0.03125, %v1593_v55 }
 0xcf1   :  { %3773 = vrsqrt.f32 %v1596_v56  ;;  %v1597_v58 = vadd.f32 1e-12, %v1595_v57 }
 0xcf3   :  { %3775 = vrsqrt.f32 %v1597_v58 }
 0xcfb   :  { %v3774_v62 = vpop.eup %3773 }
 0xcfc   :  { %v1600_v63 = vmul.f32 %v3774_v62, %v1584_v43  ;;  %v3826_v43 = vld [vmem:[#allocation2 + $0x8] sm:$0xff] }
 0xcfd   :  { %v3776_v0 = vpop.eup %3775 }
 0xcfe   :  { %v1606_v1 = vmul.f32 %v1605_v60, %v1600_v63  ;;  %v1601_v2 = vmul.f32 %v3776_v0, %v1585_v46 }
 0xd00   :  { %v1607_v4 = vmul.f32 %v1605_v60, %v1601_v2  ;;  %v4448_v5 = vadd.f32 %v1611_v3, %v1606_v1 }
 0xd02   :  { %v4450_v6 = vadd.f32 %v1611_v3, %v1607_v4 }
 0xd04   :  { %v1616_v8 = vpack.c.bf16 %v4450_v6, %v4448_v5 }
 0xd06   :  { %3547 = vmatmul.mubr.msk.bf16.vlgmr.msra.gmra.mrb[24].mxu1 %vm134_vm0, %v1616_v8 }
 0xd07   :  { %3552 = vmatprep.mubr.msk.bf16.mxu1 %vm4004_vm1, %v4003_v15 }
 0xdd9   :  { %v1679_v10 = vpop.f32.mrb[24].mxu1 }
 0xdda   :  { %v3548_v11 = vpop.f32.mrb[25].mxu1  ;;  %v1680_v13 = vadd.f32 %v3335_v9, %v1679_v10 }
 0xddb   :  { %v1682_v12 = vpop.f32.mrb[26].mxu1 }
 0xddc   :  { %v1683_v14 = vadd.f32 %v3335_v9, %v1682_v12  ;;  %v3549_v7 = vpop.f32.mrb[27].mxu1 }
 0xdde   :  { %v4457_v16 = vpack.c.bf16 %v1683_v14, %v1680_v13 }
 0xde0   :  { %1690 = vrot.lane.b32.xlu1 %v4457_v16, %s4005_s19  ;;  %1688 = vrot.lane.b32.xlu0 %v4457_v16, %s4006_s2 }
 0xde4   :  { %1692 = vrot.lane.b32.xlu1 %v4457_v16, %s4007_s15 }
 0xde8   :  { %1694 = vrot.lane.b32.xlu1 %v4457_v16, %s4008_s20 }
 0xe52   :  { %v4467_v17 = vpop.permute.xlu1 %1690  ;;  %v4469_v18 = vpop.permute.xlu0 %1688 }
 0xe53   :  { %1698 = vrot.lane.b32.xlu1 %v4467_v17, %s4008_s20  ;;  %1696 = vrot.lane.b32.xlu0 %v4469_v18, %s4008_s20 }
 0xe56   :  { %v4475_v19 = vpop.permute.xlu1 %1692 }
 0xe57   :  { %1700 = vrot.lane.b32.xlu0 %v4475_v19, %s4008_s20 }
 0xe5a   :  { %v1695_v20 = vpop.permute.xlu1 %1694 }
 0xe76   :  { %1706 = vxpose.xlu1.c.b16.start.end [1/1] (short) (narrow) %v1695_v20, 16 }
 0xec5   :  { %v1697_v21 = vpop.permute.xlu0 %1696  ;;  %v1699_v22 = vpop.permute.xlu1 %1698 }
 0xec6   :  { %1722 = vxpose.xlu0.c.b16.start.end [1/1] (short) (narrow) %v1697_v21, 16 }
 0xec9   :  { %v1701_v27 = vpop.permute.xlu0 %1700 }
 0xeca   :  { %1738 = vxpose.xlu0.c.b16.start.end [1/1] (short) (narrow) %v1699_v22, 16 }
 0xece   :  { %1754 = vxpose.xlu0.c.b16.start.end [1/1] (short) (narrow) %v1701_v27, 16 }
 0xedc   :  { %v1714_v28 = vpop.trf.xlu1 }
 0xedd   :  { %v1774_v29 = vsel %vm331_vm2, %v1714_v28, 0 }
 0xede   :  { %3551 = vmatpush3.bf16.msra.mxu1 %v1774_v29 }
 0xedf   :  { %3562 = vmatprep.subr.bf16.mxu1 %v4003_v15 }
 0xee1   :  { %3553 = vmatmul.mubr.msk.bf16.vlgmr.msra.gmra.mrb[28].mxu1 %vm327_vm3, %v4457_v16 }
 0xee2   :  { %3564 = vmatprep.mubr.msk.bf16.mxu1 %vm4004_vm1, %v4003_v15 }
 0xf2c   :  { %v1730_v31 = vpop.trf.xlu0 }
 0xf2d   :  { %v1821_v32 = vsel %vm331_vm2, %v1730_v31, 0 }
 0xf2e   :  { %3557 = vmatpush3.bf16.msra.mxu0 %v1821_v32 }
 0xf2f   :  { %3568 = vmatprep.subr.bf16.mxu0 %v4003_v15 }
 0xf30   :  { %v1746_v36 = vpop.trf.xlu0 }
 0xf31   :  { %v1868_v37 = vsel %vm331_vm2, %v1746_v36, 0  ;;  %3559 = vmatmul.mubr.msk.bf16.vlgmr.msra.gmra.mrb[24].mxu0 %vm327_vm3, %v4469_v18 }
 0xf32   :  { %3563 = vmatpush3.bf16.msra.mxu1 %v1868_v37  ;;  %3570 = vmatprep.mubr.msk.bf16.mxu0 %vm4004_vm1, %v4003_v15 }
 0xf33   :  { %3574 = vmatprep.subr.bf16.mxu1 %v4003_v15 }
 0xf34   :  { %v1762_v34 = vpop.trf.xlu0 }
 0xf35   :  { %v1915_v35 = vsel %vm331_vm2, %v1762_v34, 0  ;;  %3565 = vmatmul.mubr.msk.bf16.vlgmr.msra.gmra.mrb[32].mxu1 %vm327_vm3, %v4467_v17 }
 0xf36   :  { %3569 = vmatpush3.bf16.msra.mxu0 %v1915_v35  ;;  %3576 = vmatprep.mubr.msk.bf16.mxu1 %vm4004_vm1, %v4003_v15 }
 0xf37   :  { %3580 = vmatprep.subr.bf16.mxu0 %v4003_v15 }
 0xf39   :  { %3571 = vmatmul.mubr.msk.bf16.vlgmr.msra.gmra.mrb[28].mxu0 %vm327_vm3, %v4475_v19 }
 0xf3a   :  { %3582 = vmatprep.mubr.msk.bf16.mxu0 %vm4004_vm1, %v4003_v15 }
 0xfb4   :  { %v1810_v38 = vpop.f32.mrb[28].mxu1 }
 0xfb5   :  { %v1811_v40 = vadd.f32 %v3825_v39, %v1810_v38  ;;  %v3554_v41 = vpop.f32.mrb[29].mxu1 }
 0xfb6   :  { %v1813_v42 = vpop.f32.mrb[30].mxu1 }
 0xfb7   :  { %v1814_v45 = vadd.f32 %v3826_v43, %v1813_v42  ;;  %v3555_v46 = vpop.f32.mrb[31].mxu1  ;;  %v1958_v47 = vsel %vm517_vm4, %v1811_v40, -inf }
 0xfb8   :  { %1959 = vmax.xlane.f32.xlu1 %v1958_v47 }
 0xfb9   :  { %v1961_v48 = vsel %vm517_vm4, %v1814_v45, -inf }
 0xfba   :  { %1962 = vmax.xlane.f32.xlu0 %v1961_v48 }
0x1004   :  { %v1857_v50 = vpop.f32.mrb[24].mxu0 }
0x1005   :  { %v1858_v51 = vadd.f32 %v3825_v39, %v1857_v50  ;;  %v3560_v49 = vpop.f32.mrb[25].mxu0 }
0x1006   :  { %v1860_v52 = vpop.f32.mrb[26].mxu0 }
0x1007   :  { %v1861_v53 = vadd.f32 %v3826_v43, %v1860_v52  ;;  %v3561_v54 = vpop.f32.mrb[27].mxu0  ;;  %v1964_v55 = vsel %vm517_vm4, %v1858_v51, -inf }
0x1008   :  { %v1904_v56 = vpop.f32.mrb[32].mxu1  ;;  %1965 = vmax.xlane.f32.xlu1 %v1964_v55 }
0x1009   :  { %v1905_v57 = vadd.f32 %v3825_v39, %v1904_v56  ;;  %v3566_v58 = vpop.f32.mrb[33].mxu1  ;;  %v1967_v60 = vsel %vm517_vm4, %v1861_v53, -inf }
0x100a   :  { %v1907_v62 = vpop.f32.mrb[34].mxu1  ;;  %1968 = vmax.xlane.f32.xlu0 %v1967_v60 }
0x100b   :  { %v1908_v63 = vadd.f32 %v3826_v43, %v1907_v62  ;;  %v3567_v0 = vpop.f32.mrb[35].mxu1  ;;  %v1970_v1 = vsel %vm517_vm4, %v1905_v57, -inf }
0x100c   :  { %1971 = vmax.xlane.f32.xlu1 %v1970_v1  ;;  %v1951_v2 = vpop.f32.mrb[28].mxu0 }
0x100d   :  { %v1952_v3 = vadd.f32 %v3825_v39, %v1951_v2  ;;  %v3572_v4 = vpop.f32.mrb[29].mxu0  ;;  %v1973_v8 = vsel %vm517_vm4, %v1908_v63, -inf }
0x100e   :  { %1974 = vmax.xlane.f32.xlu0 %v1973_v8  ;;  %v1954_v9 = vpop.f32.mrb[30].mxu0 }
0x100f   :  { %v1955_v10 = vadd.f32 %v3826_v43, %v1954_v9  ;;  %v3573_v11 = vpop.f32.mrb[31].mxu0  ;;  %v1976_v12 = vsel %vm517_vm4, %v1952_v3, -inf }
0x1010   :  { %1977 = vmax.xlane.f32.xlu1 %v1976_v12 }
0x1011   :  { %v1979_v13 = vsel %vm517_vm4, %v1955_v10, -inf }
0x1012   :  { %1980 = vmax.xlane.f32.xlu0 %v1979_v13 }
0x1021   :  { %2050 = vrot.lane.b32.xlu1 %v4457_v16, %s4001_s7 }
0x1025   :  { %2054 = vrot.lane.b32.xlu1 %v4467_v17, %s4001_s7 }
0x1028   :  { %2052 = vrot.lane.b32.xlu0 %v4469_v18, %s4001_s7 }
0x102c   :  { %2056 = vrot.lane.b32.xlu0 %v4475_v19, %s4001_s7  ;;  %s4012_s7 = smov [#allocation13]  }
0x102d   :  { %s3290_s19 = sshll.u32 %s4012_s7, 4  ;;  %s3291_s19 = int_to_ptr.vmem [resolvable:$true] %s3290_s19 }
0x102e   :  { %s3959_s2 = scalar_lea.vmem %s3291_s19, 32  ;;  %p3964_p7 = scmp.lt.s32.totalorder %s3291_s19, %s3291_s19 }
0x102f   :  { %p3960_p6 = scmp.ne.s32.totalorder %s3291_s19, %s3959_s2  ;;  %p3965_p8 = scmp.lt.s32.totalorder %s3959_s2, %s3959_s2 }
0x1031   :  { %p3966_p9 = por %p3965_p8, %p3964_p7 }
0x1033   :  { %p3967_p10 = pnand %p3966_p9, %p3960_p6 }
0x1045   :  { %v1960_v14 = vpop.xlane.xlu1 %1959 }
0x1046   :  { %v1982_v7 = vsub.f32 %v1811_v40, %v1960_v14 }
0x1047   :  { %v1963_v20 = vpop.xlane.xlu0 %1962 }
0x1048   :  { %v1990_v21 = vmul.f32 1.442695, %v1982_v7  ;;  %v1983_v22 = vsub.f32 %v1814_v45, %v1963_v20 }
0x104a   :  { %3777 = vpow2.f32 %v1990_v21  ;;  %v1992_v27 = vmul.f32 1.442695, %v1983_v22 }
0x104c   :  { %3779 = vpow2.f32 %v1992_v27 }
0x1054   :  { %v3778_v28 = vpop.eup %3777 }
0x1055   :  { %v2006_v16 = vsel %vm517_vm4, %v3778_v28, 0.0 }
0x1056   :  { %v3780_v29 = vpop.eup %3779  ;;  %2007 = vadd.xlane.f32.xlu1 %v2006_v16 }
0x1057   :  { %v2009_v17 = vsel %vm517_vm4, %v3780_v29, 0.0 }
0x1058   :  { %2010 = vadd.xlane.f32.xlu0 %v2009_v17 }
0x1095   :  { %v1966_v18 = vpop.xlane.xlu1 %1965 }
0x1096   :  { %v1984_v31 = vsub.f32 %v1858_v51, %v1966_v18 }
0x1097   :  { %v1969_v32 = vpop.xlane.xlu0 %1968 }
0x1098   :  { %v1994_v19 = vmul.f32 1.442695, %v1984_v31  ;;  %v1985_v36 = vsub.f32 %v1861_v53, %v1969_v32 }
0x1099   :  { %v1972_v37 = vpop.xlane.xlu1 %1971 }
0x109a   :  { %3781 = vpow2.f32 %v1994_v19  ;;  %v1996_v34 = vmul.f32 1.442695, %v1985_v36  ;;  %v1986_v35 = vsub.f32 %v1905_v57, %v1972_v37 }
0x109b   :  { %v1975_v38 = vpop.xlane.xlu0 %1974 }
0x109c   :  { %3783 = vpow2.f32 %v1996_v34  ;;  %v1998_v39 = vmul.f32 1.442695, %v1986_v35  ;;  %v1987_v40 = vsub.f32 %v1908_v63, %v1975_v38 }
0x109d   :  { %v1978_v41 = vpop.xlane.xlu1 %1977 }
0x109e   :  { %3785 = vpow2.f32 %v1998_v39  ;;  %v2000_v42 = vmul.f32 1.442695, %v1987_v40  ;;  %v1988_v43 = vsub.f32 %v1952_v3, %v1978_v41 }
0x109f   :  { %v1981_v45 = vpop.xlane.xlu0 %1980 }
0x10a0   :  { %3787 = vpow2.f32 %v2000_v42  ;;  %v2002_v46 = vmul.f32 1.442695, %v1988_v43  ;;  %v1989_v47 = vsub.f32 %v1955_v10, %v1981_v45 }
0x10a1   :  { %v2051_v63 = vpop.permute.xlu1 %2050 }
0x10a2   :  { %3789 = vpow2.f32 %v2002_v46  ;;  %v2004_v48 = vmul.f32 1.442695, %v1989_v47 }
0x10a3   :  { %v2053_v0 = vpop.permute.xlu0 %2052 }
0x10a4   :  { %v3782_v50 = vpop.eup %3781  ;;  %3791 = vpow2.f32 %v2004_v48 }
0x10a5   :  { %v2012_v51 = vsel %vm517_vm4, %v3782_v50, 0.0  ;;  %v2055_v1 = vpop.permute.xlu1 %2054 }
0x10a6   :  { %v3784_v49 = vpop.eup %3783  ;;  %2013 = vadd.xlane.f32.xlu1 %v2012_v51 }
0x10a7   :  { %v2015_v52 = vsel %vm517_vm4, %v3784_v49, 0.0  ;;  %v2057_v2 = vpop.permute.xlu0 %2056 }
0x10a8   :  { %v3786_v53 = vpop.eup %3785  ;;  %2016 = vadd.xlane.f32.xlu0 %v2015_v52 }
0x10a9   :  { %v2018_v54 = vsel %vm517_vm4, %v3786_v53, 0.0 }
0x10aa   :  { %v3788_v55 = vpop.eup %3787  ;;  %2019 = vadd.xlane.f32.xlu1 %v2018_v54 }
0x10ab   :  { %v2021_v56 = vsel %vm517_vm4, %v3788_v55, 0.0 }
0x10ac   :  { %v3790_v57 = vpop.eup %3789  ;;  %2022 = vadd.xlane.f32.xlu0 %v2021_v56 }
0x10ad   :  { %v2024_v58 = vsel %vm517_vm4, %v3790_v57, 0.0 }
0x10ae   :  { %v3792_v60 = vpop.eup %3791  ;;  %2025 = vadd.xlane.f32.xlu1 %v2024_v58 }
0x10af   :  { %v2027_v62 = vsel %vm517_vm4, %v3792_v60, 0.0 }
0x10b0   :  { %2028 = vadd.xlane.f32.xlu0 %v2027_v62 }
0x10db   :  { %2062 = vxpose.xlu1.c.b16.start.end [1/1] (short) (narrow) %v2051_v63, 16 }
0x10dd   :  { %2078 = vxpose.xlu0.c.b16.start.end [1/1] (short) (narrow) %v2053_v0, 16 }
0x10df   :  { %2094 = vxpose.xlu1.c.b16.start.end [1/1] (short) (narrow) %v2055_v1, 16 }
0x10e1   :  { %2110 = vxpose.xlu0.c.b16.start.end [1/1] (short) (narrow) %v2057_v2, 16 }
0x10e3   :  { %v2008_v3 = vpop.xlane.xlu1 %2007 }
0x10e4   :  { %3793 = vrcp.f32 %v2008_v3 }
0x10e5   :  { %v2011_v4 = vpop.xlane.xlu0 %2010 }
0x10e6   :  { %3795 = vrcp.f32 %v2011_v4 }
0x10ee   :  { %v3794_v8 = vpop.eup %3793 }
0x10ef   :  { %v2038_v10 = vmul.f32 %v3794_v8, %v3778_v28 }
0x10f0   :  { %v3796_v9 = vpop.eup %3795 }
0x10f1   :  { %v2039_v11 = vmul.f32 %v3796_v9, %v3780_v29 }
0x10f3   :  { %v2046_v12 = vpack.c.bf16 %v2039_v11, %v2038_v10 }
0x10f5   :  { %v2130_v13 = vsel %vm517_vm4, %v2046_v12, 0 }
0x10f6   :  { %3575 = vmatpush3.bf16.xpose.msra.mxu1 %v2130_v13 }
0x10f7   :  { %3586 = vmatprep.subr.bf16.mxu1 %v4003_v15 }
0x1133   :  { %v2014_v14 = vpop.xlane.xlu1 %2013 }
0x1134   :  { %3797 = vrcp.f32 %v2014_v14 }
0x1135   :  { %v2017_v7 = vpop.xlane.xlu0 %2016 }
0x1136   :  { %3799 = vrcp.f32 %v2017_v7 }
0x1137   :  { %v2020_v20 = vpop.xlane.xlu1 %2019 }
0x1138   :  { %3801 = vrcp.f32 %v2020_v20 }
0x1139   :  { %v2023_v21 = vpop.xlane.xlu0 %2022 }
0x113a   :  { %3803 = vrcp.f32 %v2023_v21 }
0x113b   :  { %v2026_v22 = vpop.xlane.xlu1 %2025 }
0x113c   :  { %3805 = vrcp.f32 %v2026_v22 }
0x113d   :  { %v2029_v27 = vpop.xlane.xlu0 %2028 }
0x113e   :  { %v3798_v16 = vpop.eup %3797  ;;  %3807 = vrcp.f32 %v2029_v27 }
0x113f   :  { %v2040_v29 = vmul.f32 %v3798_v16, %v3782_v50 }
0x1140   :  { %v3800_v28 = vpop.eup %3799 }
0x1141   :  { %v2041_v17 = vmul.f32 %v3800_v28, %v3784_v49  ;;  %v2070_v18 = vpop.trf.xlu1 }
0x1142   :  { %v3802_v31 = vpop.eup %3801  ;;  %3577 = vmatmul.mubr.msk.bf16.vlgmr.msra.gmra.mrb[36].mxu1 %vm517_vm4, %v2070_v18 }
0x1143   :  { %v2047_v32 = vpack.c.bf16 %v2041_v17, %v2040_v29  ;;  %3588 = vmatprep.mubr.msk.bf16.mxu1 %vm4004_vm1, %v4003_v15  ;;  %v2042_v37 = vmul.f32 %v3802_v31, %v3786_v53  ;;  %v2086_v43 = vpop.trf.xlu0 }
0x1144   :  { %v3804_v19 = vpop.eup %3803 }
0x1145   :  { %v2176_v36 = vsel %vm517_vm4, %v2047_v32, 0  ;;  %v2043_v34 = vmul.f32 %v3804_v19, %v3788_v55  ;;  %v2102_v47 = vpop.trf.xlu1 }
0x1146   :  { %v3806_v35 = vpop.eup %3805  ;;  %3581 = vmatpush3.bf16.xpose.msra.mxu0 %v2176_v36 }
0x1147   :  { %v2048_v38 = vpack.c.bf16 %v2043_v34, %v2042_v37  ;;  %3592 = vmatprep.subr.bf16.mxu0 %v4003_v15  ;;  %v2044_v41 = vmul.f32 %v3806_v35, %v3790_v57  ;;  %v2118_v48 = vpop.trf.xlu0 }
0x1148   :  { %v3808_v39 = vpop.eup %3807 }
0x1149   :  { %v2222_v40 = vsel %vm517_vm4, %v2048_v38, 0  ;;  %v2045_v42 = vmul.f32 %v3808_v39, %v3792_v60 }
0x114a   :  { %3587 = vmatpush3.bf16.xpose.msra.mxu1 %v2222_v40 }
0x114b   :  { %v2049_v45 = vpack.c.bf16 %v2045_v42, %v2044_v41  ;;  %3598 = vmatprep.subr.bf16.mxu1 %v4003_v15 }
0x114d   :  { %3583 = vmatmul.mubr.msk.bf16.vlgmr.msra.gmra.mrb[32].mxu0 %vm517_vm4, %v2086_v43  ;;  %v2268_v46 = vsel %vm517_vm4, %v2049_v45, 0 }
0x114e   :  { %3593 = vmatpush3.bf16.xpose.msra.mxu0 %v2268_v46  ;;  %3594 = vmatprep.mubr.msk.bf16.mxu0 %vm4004_vm1, %v4003_v15 }
0x114f   :  { %3606 = vmatprep.subr.bf16.mxu0 %v4003_v15 }
0x1151   :  { %3589 = vmatmul.mubr.msk.bf16.vlgmr.msra.gmra.mrb[40].mxu1 %vm517_vm4, %v2102_v47 }
0x1152   :  { %3602 = vmatprep.mubr.msk.bf16.mxu1 %vm4004_vm1, %v4003_v15 }
0x1155   :  { %3595 = vmatmul.mubr.msk.bf16.vlgmr.msra.gmra.mrb[36].mxu0 %vm517_vm4, %v2118_v48 }
0x1156   :  { %3610 = vmatprep.mubr.msk.bf16.mxu0 %vm4004_vm1, %v4003_v15 }
0x1215   :  { %v2166_v50 = vpop.f32.mrb[36].mxu1 }
0x1216   :  { %2310 = vxpose.xlu1.b32.start.end [1/1] (short) (narrow) %v2166_v50, 16  ;;  %v3578_v51 = vpop.f32.mrb[37].mxu1 }
0x1217   :  { %v2169_v49 = vpop.f32.mrb[38].mxu1 }
0x1218   :  { %v3579_v52 = vpop.f32.mrb[39].mxu1 }
0x1220   :  { %v2212_v53 = vpop.f32.mrb[32].mxu0 }
0x1221   :  { %2342 = vxpose.xlu0.b32.start.end [1/1] (short) (narrow) %v2212_v53, 16  ;;  %v3584_v54 = vpop.f32.mrb[33].mxu0 }
0x1222   :  { %v2215_v55 = vpop.f32.mrb[34].mxu0 }
0x1223   :  { %v3585_v56 = vpop.f32.mrb[35].mxu0 }
0x1224   :  { %v2258_v57 = vpop.f32.mrb[40].mxu1 }
0x1225   :  { %v3590_v58 = vpop.f32.mrb[41].mxu1 }
0x1226   :  { %2374 = vxpose.xlu0.b32.start.end [1/1] (short) (narrow) %v2258_v57, 16  ;;  %v2261_v60 = vpop.f32.mrb[42].mxu1 }
0x1227   :  { %v3591_v62 = vpop.f32.mrb[43].mxu1 }
0x1228   :  { %v2304_v63 = vpop.f32.mrb[36].mxu0 }
0x1229   :  { %2406 = vxpose.xlu1.b32.start.end [1/1] (short) (narrow) %v2304_v63, 16  ;;  %v3596_v0 = vpop.f32.mrb[37].mxu0 }
0x122a   :  { %v2307_v1 = vpop.f32.mrb[38].mxu0 }
0x122b   :  { %v3597_v2 = vpop.f32.mrb[39].mxu0 }
0x1296   :  { %v2326_v3 = vpop.trf.xlu1 }
0x129a   :  { %v2327_v8 = vpop.trf.xlu1 }
0x12a1   :  { %v2358_v4 = vpop.trf.xlu0 }
0x12a5   :  { %v2359_v9 = vpop.trf.xlu0 }
0x12a9   :  { %v2390_v10 = vpop.trf.xlu0  ;;  %v2422_v11 = vpop.trf.xlu1 }
0x12aa   :  { %v2438_v12 = vcombine.low %v2326_v3, %v2390_v10  ;;  %v2439_v13 = vcombine.high %v2326_v3, %v2390_v10  ;;  %v2454_v14 = vcombine.low %v2358_v4, %v2422_v11  ;;  %v2455_v7 = vcombine.high %v2358_v4, %v2422_v11  ;;  %v3715_v3 = vld [vmem:[%s4706_s5 + $0x10] sm:$0xff]  }
0x12ab   :  { %3599 = vmatpush3.bf16.msra.mxu1 %v3715_v3 }
0x12ac   :  { %v2446_v20 = vrot.slane %v2438_v12, %v4316_v23  ;;  %v2453_v21 = vrot.slane %v2439_v13, %v4316_v23  ;;  %v2462_v22 = vrot.slane %v2454_v14, %v4316_v23  ;;  %v2469_v27 = vrot.slane %v2455_v7, %v4316_v23  ;;  %3600 = vmatprep.subr.bf16.mxu1 %v4003_v15 }
0x12ad   :  { %v2391_v16 = vpop.trf.xlu0  ;;  %v2423_v28 = vpop.trf.xlu1 }
0x12ae   :  { %v2470_v29 = vcombine.low %v2446_v20, %v2462_v22  ;;  %v2471_v17 = vcombine.high %v2446_v20, %v2462_v22  ;;  %v2486_v18 = vcombine.low %v2453_v21, %v2469_v27  ;;  %v2487_v31 = vcombine.high %v2453_v21, %v2469_v27 }
0x12af   :  { %v2506_v32 = vcombine.low %v2327_v8, %v2391_v16  ;;  %v2507_v19 = vcombine.high %v2327_v8, %v2391_v16  ;;  %v2522_v36 = vcombine.low %v2359_v9, %v2423_v28  ;;  %v2523_v37 = vcombine.high %v2359_v9, %v2423_v28  ;;  %v3716_v16 = vld [vmem:[%s4706_s5 + $0x18] sm:$0xff]  }
0x12b0   :  { %v2478_v34 = vrot.slane %v2470_v29, %v4319_v33  ;;  %v2485_v35 = vrot.slane %v2471_v17, %v4319_v33  ;;  %v2494_v38 = vrot.slane %v2486_v18, %v4319_v33  ;;  %v2501_v39 = vrot.slane %v2487_v31, %v4319_v33  ;;  %3601 = vmatpush3.bf16.msra.mxu1 %v3716_v16 }
0x12b1   :  { %v2514_v40 = vrot.slane %v2506_v32, %v4316_v23  ;;  %v2521_v41 = vrot.slane %v2507_v19, %v4316_v23  ;;  %v2530_v42 = vrot.slane %v2522_v36, %v4316_v23  ;;  %v2537_v43 = vrot.slane %v2523_v37, %v4316_v23  ;;  %3614 = vmatprep.subr.bf16.mxu1 %v4003_v15 }
0x12b2   :  { %v2574_v45 = vcombine.low %v2478_v34, %v2485_v35  ;;  %v3347_v46 = vcombine.high %v2478_v34, %v2485_v35  ;;  %v2590_v47 = vcombine.low %v2494_v38, %v2501_v39  ;;  %v3348_v48 = vcombine.high %v2494_v38, %v2501_v39 }
0x12b3   :  { %v2538_v50 = vcombine.low %v2514_v40, %v2530_v42  ;;  %v2539_v51 = vcombine.high %v2514_v40, %v2530_v42  ;;  %v2554_v49 = vcombine.low %v2521_v41, %v2537_v43  ;;  %v2555_v52 = vcombine.high %v2521_v41, %v2537_v43 }
0x12b4   :  { %v2581_v53 = vrot.slane %v2574_v45, %v4316_v23  ;;  %v2589_v54 = vrot.slane %v3347_v46, %v4316_v23  ;;  %v2597_v55 = vrot.slane %v2590_v47, %v4316_v23  ;;  %v2605_v56 = vrot.slane %v3348_v48, %v4316_v23 }
0x12b5   :  { %v2546_v57 = vrot.slane %v2538_v50, %v4319_v33  ;;  %v2553_v58 = vrot.slane %v2539_v51, %v4319_v33  ;;  %v2562_v60 = vrot.slane %v2554_v49, %v4319_v33  ;;  %v2569_v62 = vrot.slane %v2555_v52, %v4319_v33 }
0x12b6   :  { %v2607_v63 = vcombine.high %v2581_v53, %v2589_v54  ;;  %v2623_v0 = vcombine.high %v2597_v55, %v2605_v56  ;;  %v2606_v1 = vcombine.low %v2581_v53, %v2589_v54  ;;  %v2622_v2 = vcombine.low %v2597_v55, %v2605_v56 }
0x12b7   :  { %v2642_v4 = vcombine.low %v2546_v57, %v2553_v58  ;;  %v3349_v8 = vcombine.high %v2546_v57, %v2553_v58  ;;  %v2658_v9 = vcombine.low %v2562_v60, %v2569_v62  ;;  %v3350_v10 = vcombine.high %v2562_v60, %v2569_v62  ;;  %v4602_v62 = vld [vmem:[%s4710_s9 + $0x8] sm:$0x3f] }
0x12b8   :  { %v2614_v11 = vrot.slane %v2606_v1, %v4319_v33  ;;  %v2630_v12 = vrot.slane %v2622_v2, %v4319_v33  ;;  %v2621_v21 = vrot.slane %v2607_v63, %v4319_v33  ;;  %v2637_v22 = vrot.slane %v2623_v0, %v4319_v33 }
0x12b9   :  { %v2649_v13 = vrot.slane %v2642_v4, %v4316_v23  ;;  %v2657_v14 = vrot.slane %v3349_v8, %v4316_v23  ;;  %v2665_v7 = vrot.slane %v2658_v9, %v4316_v23  ;;  %v2673_v20 = vrot.slane %v3350_v10, %v4316_v23 }
0x12ba   :  { %v2638_v27 = vcombine.low %v2614_v11, %v2630_v12  ;;  %v2640_v36 = vcombine.low %v2621_v21, %v2637_v22  ;;  %v2639_v34 = vcombine.high %v2614_v11, %v2630_v12  ;;  %v2641_v42 = vcombine.high %v2621_v21, %v2637_v22 }
0x12bb   :  { %v2675_v28 = vcombine.high %v2649_v13, %v2657_v14  ;;  %v2691_v29 = vcombine.high %v2665_v7, %v2673_v20  ;;  %v2674_v17 = vcombine.low %v2649_v13, %v2657_v14  ;;  %v2690_v18 = vcombine.low %v2665_v7, %v2673_v20 }
0x12bc   :  { %v2749_v63 = vrot.slane %v4602_v62, %v4209_v25 }
0x12bd   :  { %v2689_v31 = vrot.slane %v2675_v28, %v4319_v33  ;;  %v2705_v23 = vrot.slane %v2691_v29, %v4319_v33  ;;  %v2682_v32 = vrot.slane %v2674_v17, %v4319_v33  ;;  %v2698_v19 = vrot.slane %v2690_v18, %v4319_v33  ;;  %v3718_v29 = vld [vmem:[%s4707_s6 + $0x18] sm:$0xff]  }
0x12bf   :  { %v2708_v37 = vcombine.low %v2689_v31, %v2705_v23  ;;  %v2707_v35 = vcombine.high %v2682_v32, %v2698_v19  ;;  %v2706_v38 = vcombine.low %v2682_v32, %v2698_v19  ;;  %v2709_v41 = vcombine.high %v2689_v31, %v2705_v23 }
0x12c1   :  { %v3693_v39 = vpack.i.bf16 %v2708_v37, %v2640_v36  ;;  %v3688_v40 = vpack.i.bf16 %v2707_v35, %v2639_v34  ;;  %v3698_v43 = vpack.i.bf16 %v2709_v41, %v2641_v42  ;;  %v2837_v36 = vrot.slane %v4602_v62, %v4213_v30 }
0x12c3   :  { %3694 = vrot.lane.b32.xlu1 %v3693_v39, %s3995_s1  ;;  %3689 = vrot.lane.b32.xlu0 %v3688_v40, %s3994_s26  ;;  %v2843_v40 = vrot.slane %v4602_v62, %v4397_v44 }
0x12c7   :  { %3699 = vrot.lane.b32.xlu1 %v3698_v43, %s4011_s16 }
0x1335   :  { %v3695_v45 = vpop.permute.xlu1 %3694  ;;  %v3690_v33 = vpop.permute.xlu0 %3689 }
0x1336   :  { %v3692_v46 = vunpack.i.h.bf16 %v3690_v33  ;;  %v3691_v47 = vunpack.i.l.bf16 %v3690_v33  ;;  %v3697_v48 = vunpack.i.h.bf16 %v3695_v45  ;;  %v3696_v50 = vunpack.i.l.bf16 %v3695_v45  ;;  %v3719_v33 = vld [vmem:[%s4709_s8 + $0x20] sm:$0xff]  }
0x1338   :  { %v2734_v51 = vsel %vm327_vm3, %v2638_v27, %v3691_v47  ;;  %v2735_v49 = vsel %vm327_vm3, %v2706_v38, %v3692_v46  ;;  %v3720_v46 = vld [vmem:[%s4709_s8 + $0x28] sm:$0xff]   ;;  %v3721_v47 = vld [vmem:[%s4709_s8 + $0x30] sm:$0xff]  }
0x1339   :  { %v3700_v52 = vpop.permute.xlu1 %3699  ;;  %v2736_v55 = vsel %vm517_vm4, %v2734_v51, %v3696_v50  ;;  %v2737_v56 = vsel %vm517_vm4, %v2735_v49, %v3697_v48  ;;  %v3722_v48 = vld [vmem:[%s4709_s8 + $0x38] sm:$0xff]   ;;  %v3362_v50 = vld [vmem:[#allocation10 + $0x1] ss:$0 sm:$0xff] }
0x133a   :  { %v3702_v53 = vunpack.i.h.bf16 %v3700_v52  ;;  %v3701_v54 = vunpack.i.l.bf16 %v3700_v52 }
0x133c   :  { %v2738_v57 = vsel %vm1298_vm5, %v2736_v55, %v3701_v54  ;;  %v2739_v58 = vsel %vm1298_vm5, %v2737_v56, %v3702_v53 }
0x133d   :  { %v2740_v60 = vpack.c.bf16 %v2739_v58, %v2738_v57 }
0x133f   :  { %3603 = vmatmul.mubr.msk.bf16.vlgmr.msra.gmra.mrb[44].mxu1 %vm134_vm0, %v2740_v60 }
0x1340   :  { %3622 = vmatprep.mubr.msk.bf16.mxu1 %vm4004_vm1, %v4003_v15  ;;  %3615 = vmatpush3.bf16.msra.mxu1 %v3719_v33 }
0x1341   :  { %3616 = vmatprep.subr.bf16.mxu1 %v4003_v15 }
0x1344   :  { %3617 = vmatpush3.bf16.msra.mxu1 %v3720_v46 }
0x1345   :  { %3618 = vmatprep.subr.bf16.mxu1 %v4003_v15 }
0x1348   :  { %3619 = vmatpush3.bf16.msra.mxu1 %v3721_v47 }
0x1349   :  { %3620 = vmatprep.subr.bf16.mxu1 %v4003_v15 }
0x134c   :  { %3621 = vmatpush3.bf16.msra.mxu1 %v3722_v48 }
0x134d   :  { %3642 = vmatprep.subr.bf16.mxu1 %v4003_v15 }
0x1412   :  { %v2799_v0 = vpop.f32.mrb[44].mxu1 }
0x1413   :  { %v2800_v1 = vadd.f32 %v2799_v0, %v2749_v63  ;;  %v3604_v2 = vpop.f32.mrb[45].mxu1 }
0x1414   :  { %v2802_v3 = vpop.f32.mrb[46].mxu1 }
0x1415   :  { %v2806_v4 = vadd.f32 %v2800_v1, %v4448_v5  ;;  %v2803_v8 = vadd.f32 %v2802_v3, %v2749_v63  ;;  %v3605_v9 = vpop.f32.mrb[47].mxu1 }
0x1417   :  { %v2807_v10 = vadd.f32 %v2803_v8, %v4450_v6  ;;  %v2808_v11 = vsel %vm134_vm0, %v2806_v4, 0.0  ;;  %v3717_v6 = vld [vmem:[%s4707_s6 + $0x10] sm:$0xff]  }
0x1418   :  { %2809 = vadd.xlane.f32.xlu1 %v2808_v11  ;;  %3607 = vmatpush3.bf16.msra.mxu0 %v3717_v6 }
0x1419   :  { %v2811_v12 = vsel %vm134_vm0, %v2807_v10, 0.0  ;;  %3608 = vmatprep.subr.bf16.mxu0 %v4003_v15 }
0x141a   :  { %2812 = vadd.xlane.f32.xlu0 %v2811_v12 }
0x141c   :  { %3609 = vmatpush3.bf16.msra.mxu0 %v3718_v29 }
0x141d   :  { %3626 = vmatprep.subr.bf16.mxu0 %v4003_v15 }
0x14a5   :  { %v2810_v13 = vpop.xlane.xlu1 %2809 }
0x14a6   :  { %v2814_v14 = vmul.f32 0.03125, %v2810_v13 }
0x14a7   :  { %v2813_v7 = vpop.xlane.xlu0 %2812 }
0x14a8   :  { %v2816_v20 = vsub.f32 %v2806_v4, %v2814_v14  ;;  %v2815_v21 = vmul.f32 0.03125, %v2813_v7 }
0x14aa   :  { %v2817_v22 = vsub.f32 %v2807_v10, %v2815_v21  ;;  %v2818_v27 = vmul.f32 %v2816_v20, %v2816_v20  ;;  %v2947_v21 = vrot.slane %v4602_v62, %v1503_v26 }
0x14ac   :  { %v2820_v16 = vsel %vm134_vm0, %v2818_v27, 0.0  ;;  %v2819_v5 = vmul.f32 %v2817_v22, %v2817_v22 }
0x14ad   :  { %2821 = vadd.xlane.f32.xlu0 %v2820_v16 }
0x14ae   :  { %v2823_v28 = vsel %vm134_vm0, %v2819_v5, 0.0 }
0x14af   :  { %2824 = vadd.xlane.f32.xlu1 %v2823_v28 }
0x153a   :  { %v2822_v17 = vpop.xlane.xlu0 %2821 }
0x153b   :  { %v2826_v18 = vmul.f32 0.03125, %v2822_v17 }
0x153c   :  { %v2825_v31 = vpop.xlane.xlu1 %2824 }
0x153d   :  { %v2828_v23 = vadd.f32 1e-12, %v2826_v18  ;;  %v2827_v32 = vmul.f32 0.03125, %v2825_v31 }
0x153f   :  { %3809 = vrsqrt.f32 %v2828_v23  ;;  %v2829_v19 = vadd.f32 1e-12, %v2827_v32 }
0x1541   :  { %3811 = vrsqrt.f32 %v2829_v19 }
0x1549   :  { %v3810_v37 = vpop.eup %3809 }
0x154a   :  { %v2832_v34 = vmul.f32 %v3810_v37, %v2816_v20 }
0x154b   :  { %v3812_v35 = vpop.eup %3811 }
0x154c   :  { %v2838_v38 = vmul.f32 %v2837_v36, %v2832_v34  ;;  %v2833_v39 = vmul.f32 %v3812_v35, %v2817_v22 }
0x154e   :  { %v2839_v41 = vmul.f32 %v2837_v36, %v2833_v39  ;;  %v2844_v42 = vadd.f32 %v2843_v40, %v2838_v38 }
0x1550   :  { %v2845_v43 = vadd.f32 %v2843_v40, %v2839_v41  ;;  %v3723_v40 = vld [vmem:[%s4711_s10] sm:$0xff]   ;;  %v3724_v41 = vld [vmem:[%s4711_s10 + $0x8] sm:$0xff]  }
0x1552   :  { %v2846_v45 = vpack.c.bf16 %v2845_v43, %v2844_v42 }
0x1554   :  { %3611 = vmatmul.mubr.msk.bf16.vlgmr.msra.gmra.mrb[40].mxu0 %vm134_vm0, %v2846_v45 }
0x1555   :  { %3630 = vmatprep.mubr.msk.bf16.mxu0 %vm4004_vm1, %v4003_v15  ;;  %3627 = vmatpush3.bf16.msra.mxu0 %v3723_v40 }
0x1556   :  { %3628 = vmatprep.subr.bf16.mxu0 %v4003_v15 }
0x1559   :  { %3629 = vmatpush3.bf16.msra.mxu0 %v3724_v41 }
0x155a   :  { %3634 = vmatprep.subr.bf16.mxu0 %v4003_v15 }
0x1627   :  { %v2909_v51 = vpop.f32.mrb[40].mxu0 }
0x1628   :  { %v2910_v49 = vadd.f32 %v3362_v50, %v2909_v51  ;;  %v3612_v52 = vpop.f32.mrb[41].mxu0 }
0x1629   :  { %v2912_v53 = vpop.f32.mrb[42].mxu0 }
0x162a   :  { %v2916_v54 = vmul.f32 %v2910_v49, %v2910_v49  ;;  %v2913_v55 = vadd.f32 %v3362_v50, %v2912_v53  ;;  %v3613_v56 = vpop.f32.mrb[43].mxu0  ;;  %v3047_v50 = vrot.slane %v4602_v62, %v4440_v59  ;;  %v3053_v53 = vrot.slane %v4602_v62, %v1610_v61 }
0x162c   :  { %v2918_v57 = vmul.f32 %v2916_v54, %v2910_v49  ;;  %v2917_v58 = vmul.f32 %v2913_v55, %v2913_v55 }
0x162e   :  { %v2920_v60 = vmul.f32 0.044715, %v2918_v57  ;;  %v2919_v63 = vmul.f32 %v2917_v58, %v2913_v55 }
0x1630   :  { %v2922_v0 = vadd.f32 %v2920_v60, %v2910_v49  ;;  %v2921_v1 = vmul.f32 0.044715, %v2919_v63 }
0x1632   :  { %v2924_v2 = vmul.f32 0.7978846, %v2922_v0  ;;  %v2923_v3 = vadd.f32 %v2921_v1, %v2913_v55  ;;  %v3064_v0 = vld [vmem:[%s4713_s12] sm:$0xf] }
0x1633   :  { %v3074_v24 = vrot.slane %v3064_v0, %v4209_v25  ;;  %v3725_v25 = vld [vmem:[%s4711_s10 + $0x10] sm:$0xff]  }
0x1634   :  { %3813 = vtanh.f32 %v2924_v2  ;;  %v2925_v4 = vmul.f32 0.7978846, %v2923_v3 }
0x1636   :  { %3815 = vtanh.f32 %v2925_v4 }
0x163e   :  { %v3814_v8 = vpop.eup %3813 }
0x163f   :  { %v2928_v9 = vadd.f32 1.0, %v3814_v8 }
0x1640   :  { %v3816_v10 = vpop.eup %3815 }
0x1641   :  { %v2930_v11 = vmul.f32 0.5, %v2928_v9  ;;  %v2929_v12 = vadd.f32 1.0, %v3816_v10 }
0x1643   :  { %v2931_v13 = vmul.f32 0.5, %v2929_v12  ;;  %v2932_v14 = vmul.f32 %v2930_v11, %v2910_v49 }
0x1645   :  { %v2933_v7 = vmul.f32 %v2931_v13, %v2913_v55 }
0x1647   :  { %v2934_v20 = vpack.c.bf16 %v2933_v7, %v2932_v14  ;;  %v3726_v14 = vld [vmem:[%s4711_s10 + $0x18] sm:$0xff]  }
0x1649   :  { %3623 = vmatmul.mubr.msk.bf16.vlgmr.msra.gmra.mrb[48].mxu1 %vm1529_vm6, %v2934_v20 }
0x164a   :  { %3646 = vmatprep.mubr.msk.bf16.mxu1 %vm4004_vm1, %v4003_v15 }
0x171c   :  { %v3009_v22 = vpop.f32.mrb[48].mxu1 }
0x171d   :  { %v3010_v27 = vadd.f32 %v3009_v22, %v2947_v21  ;;  %v3624_v16 = vpop.f32.mrb[49].mxu1  ;;  %v3148_v22 = vrot.slane %v3064_v0, %v4213_v30 }
0x171e   :  { %v3012_v5 = vpop.f32.mrb[50].mxu1  ;;  %v3153_v16 = vrot.slane %v3064_v0, %v4397_v44 }
0x171f   :  { %v3016_v28 = vadd.f32 %v3010_v27, %v2844_v42  ;;  %v3013_v6 = vadd.f32 %v3012_v5, %v2947_v21  ;;  %v3625_v29 = vpop.f32.mrb[51].mxu1 }
0x1721   :  { %v3017_v17 = vadd.f32 %v3013_v6, %v2845_v43  ;;  %v3018_v18 = vsel %vm134_vm0, %v3016_v28, 0.0 }
0x1722   :  { %3019 = vadd.xlane.f32.xlu1 %v3018_v18  ;;  %v3728_v18 = vld [vmem:[#allocation11 + $0x8] sm:$0xff]  }
0x1723   :  { %v3021_v31 = vsel %vm134_vm0, %v3017_v17, 0.0 }
0x1724   :  { %3022 = vadd.xlane.f32.xlu0 %v3021_v31  ;;  %v3159_v31 = vrot.slane %v3064_v0, %v4440_v59 }
0x17af   :  { %v3020_v23 = vpop.xlane.xlu1 %3019 }
0x17b0   :  { %v3024_v32 = vmul.f32 0.03125, %v3020_v23 }
0x17b1   :  { %v3023_v19 = vpop.xlane.xlu0 %3022 }
0x17b2   :  { %v3026_v36 = vsub.f32 %v3016_v28, %v3024_v32  ;;  %v3025_v37 = vmul.f32 0.03125, %v3023_v19 }
0x17b4   :  { %v3027_v26 = vsub.f32 %v3017_v17, %v3025_v37  ;;  %v3028_v34 = vmul.f32 %v3026_v36, %v3026_v36  ;;  %v3727_v17 = vld [vmem:[#allocation11] sm:$0xff]  }
0x17b5   :  { %3643 = vmatpush3.bf16.msra.mxu1 %v3727_v17 }
0x17b6   :  { %v3030_v35 = vsel %vm134_vm0, %v3028_v34, 0.0  ;;  %v3029_v38 = vmul.f32 %v3027_v26, %v3027_v26  ;;  %3644 = vmatprep.subr.bf16.mxu1 %v4003_v15 }
0x17b7   :  { %3031 = vadd.xlane.f32.xlu1 %v3030_v35 }
0x17b8   :  { %v3033_v39 = vsel %vm134_vm0, %v3029_v38, 0.0 }
0x17b9   :  { %3034 = vadd.xlane.f32.xlu0 %v3033_v39  ;;  %3645 = vmatpush3.bf16.msra.mxu1 %v3728_v18 }
0x1844   :  { %v3032_v42 = vpop.xlane.xlu1 %3031 }
0x1845   :  { %v3036_v43 = vmul.f32 0.03125, %v3032_v42 }
0x1846   :  { %v3035_v45 = vpop.xlane.xlu0 %3034 }
0x1847   :  { %v3038_v33 = vadd.f32 1e-12, %v3036_v43  ;;  %v3037_v46 = vmul.f32 0.03125, %v3035_v45 }
0x1849   :  { %3817 = vrsqrt.f32 %v3038_v33  ;;  %v3039_v47 = vadd.f32 1e-12, %v3037_v46 }
0x184b   :  { %3819 = vrsqrt.f32 %v3039_v47 }
0x1853   :  { %v3818_v48 = vpop.eup %3817 }
0x1854   :  { %v3042_v51 = vmul.f32 %v3818_v48, %v3026_v36 }
0x1855   :  { %v3820_v49 = vpop.eup %3819 }
0x1856   :  { %v3043_v52 = vmul.f32 %v3820_v49, %v3027_v26  ;;  %v3048_v54 = vmul.f32 %v3047_v50, %v3042_v51  ;;  %v3385_v26 = vld [vmem:[%s4714_s13] ss:$0 sm:$0xff] }
0x1858   :  { %v3049_v55 = vmul.f32 %v3047_v50, %v3043_v52  ;;  %v3054_v57 = vadd.f32 %v3053_v53, %v3048_v54 }
0x185a   :  { %v3055_v56 = vadd.f32 %v3053_v53, %v3049_v55 }
0x185c   :  { %v3066_v58 = vrot.slane %v3055_v56, 7 }
0x185e   :  { %v3069_v60 = vsel %vm3068_vm7, %v3054_v57, %v3066_v58 }
0x185f   :  { %v3070_v63 = vpack.c.bf16 %v3069_v60, %v3069_v60 }
0x1861   :  { %3631 = vmatmul.mubr.msk.bf16.vlgmr.msra.gmra.mrb[44].mxu0 %vm134_vm0, %v3070_v63 }
0x1862   :  { %3638 = vmatprep.mubr.msk.bf16.mxu0 %vm4004_vm1, %v4003_v15  ;;  %3635 = vmatpush3.bf16.msra.mxu0 %v3725_v25 }
0x1863   :  { %3636 = vmatprep.subr.bf16.mxu0 %v4003_v15 }
0x1866   :  { %3637 = vmatpush3.bf16.msra.mxu0 %v3726_v14 }
0x1934   :  { %v3124_v61 = vpop.f32.mrb[44].mxu0 }
0x1935   :  { %v3125_v62 = vadd.f32 %v3124_v61, %v3074_v24  ;;  %v3632_v1 = vpop.f32.mrb[45].mxu0 }
0x1936   :  { %v3127_v2 = vpop.f32.mrb[46].mxu0 }
0x1937   :  { %3821 = vtanh.f32 %v3125_v62  ;;  %v3633_v3 = vpop.f32.mrb[47].mxu0 }
0x1941   :  { %v3822_v4 = vpop.eup %3821 }
0x1942   :  { %v3132_v8 = vsel %vm3131_vm8, %v3822_v4, 0.0 }
0x1943   :  { %3133 = vadd.xlane.f32.xlu0 %v3132_v8 }
0x19d0   :  { %v3134_v9 = vpop.xlane.xlu0 %3133 }
0x19d1   :  { %v3135_v10 = vmul.f32 0.03125, %v3134_v9 }
0x19d3   :  { %v3136_v11 = vsub.f32 %v3822_v4, %v3135_v10 }
0x19d5   :  { %v3137_v12 = vmul.f32 %v3136_v11, %v3136_v11 }
0x19d7   :  { %v3138_v13 = vsel %vm3131_vm8, %v3137_v12, 0.0 }
0x19d8   :  { %3139 = vadd.xlane.f32.xlu1 %v3138_v13 }
0x1a65   :  { %v3140_v7 = vpop.xlane.xlu1 %3139 }
0x1a66   :  { %v3141_v20 = vmul.f32 0.03125, %v3140_v7 }
0x1a68   :  { %v3142_v21 = vadd.f32 1e-05, %v3141_v20 }
0x1a6a   :  { %3823 = vrsqrt.f32 %v3142_v21 }
0x1a74   :  { %v3824_v27 = vpop.eup %3823 }
0x1a75   :  { %v3144_v5 = vmul.f32 %v3824_v27, %v3136_v11 }
0x1a77   :  { %v3149_v28 = vmul.f32 %v3148_v22, %v3144_v5 }
0x1a79   :  { %v3154_v6 = vadd.f32 %v3153_v16, %v3149_v28 }
0x1a7b   :  { %v3155_v29 = vpack.c.bf16 %v3154_v6, %v3154_v6 }
0x1a7d   :  { %3639 = vmatmul.mubr.msk.bf16.vlgmr.msra.gmra.mrb[48].mxu0 %vm134_vm0, %v3155_v29 }
0x1b50   :  { %v3209_v23 = vpop.f32.mrb[48].mxu0 }
0x1b51   :  { %v3210_v32 = vadd.f32 %v3209_v23, %v3159_v31  ;;  %v3640_v30 = vpop.f32.mrb[49].mxu0 }
0x1b52   :  { %v3212_v19 = vpop.f32.mrb[50].mxu0 }
0x1b53   :  { %v3215_v36 = vmax.f32 %v3210_v32, 0.0  ;;  %v3641_v44 = vpop.f32.mrb[51].mxu0 }
0x1b55   :  { %v3216_v37 = vpack.c.bf16 %v3215_v36, %v3215_v36 }
0x1b57   :  { %3647 = vmatmul.mubr.msk.bf16.vlgmr.msra.gmra.mrb[52].mxu1 %vm134_vm0, %v3216_v37 }
0x1c2a   :  { %v3277_v15 = vpop.f32.mrb[52].mxu1 }
0x1c2b   :  { %v3278_v34 = vadd.f32 %v3385_v26, %v3277_v15  ;;  %v3648_v35 = vpop.f32.mrb[53].mxu1 }
0x1c2c   :  { %v3280_v59 = vpop.f32.mrb[54].mxu1 }
0x1c2d   :  { %3283 = vst [vmem:[#allocation13] sm:$0x3] %v3278_v34  ;;  %v3649_v38 = vpop.f32.mrb[55].mxu1 }
0x1c2e   :  { %3970 = shalt.err (!%p3967_p10)
}
0x1c2f   :  { %s3971_s13 = scalar_lea.hbm %s4715_s14, 32 }
0x1c30   :  { %p3972_p11 = scmp.ne.s32.totalorder %s4715_s14, %s3971_s13  ;;  %p3975_p12 = scmp.lt.u32.totalorder %s3971_s13, %s4715_s14 }
0x1c32   :  { %p3977_p13 = pnand %p3975_p12, %p3972_p11 }
0x1c34   :  { %3980 = shalt.err (!%p3977_p13)
}
0x1c35   :  { %3293 = dma.vmem_to_hbm [thread:$0]  %s3291_s19, 32, %s4715_s14, [#allocation4]  }
0x1c36   :  { %3989 = dma.done.wait [#allocation4], 32  }
0x1c37   :  { %3990 = vsyncadd [#allocation4], 4294967264 }
0x1c38   :  { %3297 = vsyncpa [#allocation3], 1 }
0x1c39   :  { %3298 = vsyncpa [#allocation6], 1 }
0x1c3a   :  { %3299 = vsyncpa [#allocation9], 1 }
0x1c3b   :  { %3300 = vsyncpa [#allocation12], 1 }
0x1c3c   :  { %3301 = vsyncpa [#allocation4], 1 }

</bundles_post_ra>
